<compile_context>
chip_gen: v7x
topology: tpu7x:2x2x1
jax: 0.10.0
libtpu: 0.0.40
codegen_flags: <defaults>
</compile_context>

<pallas_src>
import math
import functools

import jax
import jax.numpy as jnp
from jax import lax
from jax.experimental import pallas as pl
from jax.experimental.pallas import tpu as pltpu


# ----------------------------------------------------------------------------
# Fused FlashMHA kernel: in-proj + online-softmax attention + out-proj
# ----------------------------------------------------------------------------

def _fused_mha_kernel(q_ref, k_ref, v_ref, w3_ref, b3_ref, wo_ref, bo_ref,
                      o_ref, qp_sc, m_sc, l_sc, acc_sc, *,
                      num_heads, head_dim):
    """Blocks per grid step (b, kv):
       q_ref : (1, Sq, E)  bf16 raw queries        (resident across kv)
       k_ref : (1, Bk, E)  bf16 raw keys           (fresh per kv block)
       v_ref : (1, Bk, E)  bf16 raw values         (fresh per kv block)
       w3_ref: (3, E, E)   bf16 packed in-proj weights, pre-transposed,
                           softmax scale folded into the Q slice (resident)
       b3_ref: (3, 1, E)   f32 packed in-proj bias (scale folded into Q slice)
       wo_ref: (E, E)      bf16 out-proj weight, pre-transposed (resident)
       bo_ref: (1, E)      f32 out-proj bias
       o_ref : (1, Sq, E)  f32 output              (resident across kv)
       scratch: qp_sc (Sq,E) bf16 projected Q; m/l (H,Sq,1) f32; acc (H,Sq,D) f32
    """
    H, D = num_heads, head_dim
    kv_idx = pl.program_id(1)

    @pl.when(kv_idx == 0)
    def _():
        # Q in-projection, done once per batch (scale already folded in).
        qacc = jnp.dot(q_ref[0], w3_ref[0], preferred_element_type=jnp.float32)
        qp_sc[...] = (qacc + b3_ref[0]).astype(qp_sc.dtype)
        m_sc[...] = jnp.full_like(m_sc, -jnp.inf)
        l_sc[...] = jnp.zeros_like(l_sc)
        acc_sc[...] = jnp.zeros_like(acc_sc)

    # K / V in-projection for this KV block (each block visited exactly once).
    kp = (jnp.dot(k_ref[0], w3_ref[1], preferred_element_type=jnp.float32)
          + b3_ref[1]).astype(jnp.bfloat16)                  # (Bk, E)
    vp = (jnp.dot(v_ref[0], w3_ref[2], preferred_element_type=jnp.float32)
          + b3_ref[2]).astype(jnp.bfloat16)                  # (Bk, E)

    q_all = qp_sc[...]                                       # (Sq, E) bf16

    for h in range(H):        # static unroll: full schedule visible to LLO
        qh = q_all[:, h * D:(h + 1) * D]                     # (Sq, D)
        kh = kp[:, h * D:(h + 1) * D]                        # (Bk, D)
        vh = vp[:, h * D:(h + 1) * D]                        # (Bk, D)
        # QK^T: bf16 operands, f32 accumulation, contraction on D (no k.T).
        s = lax.dot_general(qh, kh, (((1,), (1,)), ((), ())),
                            preferred_element_type=jnp.float32)   # (Sq, Bk)
        m_prev = m_sc[h]                                     # (Sq, 1)
        m_new = jnp.maximum(m_prev, jnp.max(s, axis=-1, keepdims=True))
        alpha = jnp.exp(m_prev - m_new)
        p = jnp.exp(s - m_new)                               # (Sq, Bk) f32
        l_sc[h] = alpha * l_sc[h] + jnp.sum(p, axis=-1, keepdims=True)
        acc_sc[h] = alpha * acc_sc[h] + jnp.dot(
            p.astype(vh.dtype), vh, preferred_element_type=jnp.float32)
        m_sc[h] = m_new

    @pl.when(kv_idx == pl.num_programs(1) - 1)
    def _():
        # Normalize per head, reassemble lane-dense (Sq, E), then out_proj.
        ctx_heads = []
        for h in range(H):
            inv_l = pl.reciprocal(l_sc[h], approx=True)      # EUP, free slot
            ctx_heads.append((acc_sc[h] * inv_l).astype(jnp.bfloat16))
        ctx = jnp.concatenate(ctx_heads, axis=-1)            # (Sq, E) bf16
        out = jnp.dot(ctx, wo_ref[...], preferred_element_type=jnp.float32)
        o_ref[0] = (out + bo_ref[...]).astype(o_ref.dtype)   # f32 (out_fp32)


# ----------------------------------------------------------------------------
# FlashMHA forward (thin wrapper; hot path is one pallas_call)
# ----------------------------------------------------------------------------

def flash_mha_forward(q, k, v, params, num_heads, block_kv=512):
    """q: (B, Sq, E), k/v: (B, Sk, E) float32. Returns ((B, Sq, E) f32, None)."""
    B, Sq, E = q.shape
    Sk = k.shape[1]
    H = num_heads
    D = E // H
    scale = 1.0 / math.sqrt(D)
    cdt = jnp.bfloat16   # TPU analogue of the fp16 autocast path

    w_in = params["in_proj_weight"]      # (3E, E)
    b_in = params["in_proj_bias"]        # (3E,)
    w_out = params["out_proj_weight"]    # (E, E)
    b_out = params["out_proj_bias"]      # (E,)

    # Pre-transpose weights (kernel never transposes) and fold the softmax
    # scale into the Q branch (zero runtime cost).  Biases kept f32.
    fold = jnp.array([scale, 1.0, 1.0], jnp.float32).reshape(3, 1, 1)
    w3 = jnp.transpose(w_in.reshape(3, E, E), (0, 2, 1)).astype(jnp.float32)
    w3 = (w3 * fold).astype(cdt)                              # (3, E, E) bf16
    b3 = b_in.reshape(3, 1, E).astype(jnp.float32) * fold     # (3, 1, E) f32
    wo = w_out.T.astype(cdt)                                  # (E, E) bf16
    bo = b_out.reshape(1, E).astype(jnp.float32)              # (1, E) f32

    bkv = Sk if Sk <= block_kv else block_kv
    # TODO(synk): pad/mask ragged KV lengths; currently require whole KV blocks.
    assert Sk % bkv == 0, "Sk must be a multiple of the KV block size"
    grid_kv = Sk // bkv

    qb = q.astype(cdt)
    kb = k.astype(cdt)
    vb = v.astype(cdt)

    kern = functools.partial(_fused_mha_kernel, num_heads=H, head_dim=D)
    out = pl.pallas_call(
        kern,
        out_shape=jax.ShapeDtypeStruct((B, Sq, E), jnp.float32),
        grid_spec=pltpu.PrefetchScalarGridSpec(
            num_scalar_prefetch=0,
            grid=(B, grid_kv),
            in_specs=[
                pl.BlockSpec((1, Sq, E), lambda b, kv: (b, 0, 0)),    # q (resident/b)
                pl.BlockSpec((1, bkv, E), lambda b, kv: (b, kv, 0)),  # k block
                pl.BlockSpec((1, bkv, E), lambda b, kv: (b, kv, 0)),  # v block
                pl.BlockSpec((3, E, E), lambda b, kv: (0, 0, 0)),     # in-proj W
                pl.BlockSpec((3, 1, E), lambda b, kv: (0, 0, 0)),     # in-proj b
                pl.BlockSpec((E, E), lambda b, kv: (0, 0)),           # out-proj W
                pl.BlockSpec((1, E), lambda b, kv: (0, 0)),           # out-proj b
            ],
            out_specs=pl.BlockSpec((1, Sq, E), lambda b, kv: (b, 0, 0)),
            scratch_shapes=[
                pltpu.VMEM((Sq, E), cdt),                 # projected Q
                pltpu.VMEM((H, Sq, 1), jnp.float32),      # running max  m
                pltpu.VMEM((H, Sq, 1), jnp.float32),      # running sum  l
                pltpu.VMEM((H, Sq, D), jnp.float32),      # running unnormalized ctx
            ],
        ),
        compiler_params=pltpu.CompilerParams(
            dimension_semantics=("parallel", "arbitrary")),
    )(qb, kb, vb, w3, b3, wo, bo)
    return out, None


# ----------------------------------------------------------------------------
# Reference (plain JAX, f32) for sanity checking
# ----------------------------------------------------------------------------

def flash_mha_reference(q, k, v, params, num_heads):
    B, Sq, E = q.shape
    Sk = k.shape[1]
    H = num_heads
    D = E // H
    scale = 1.0 / math.sqrt(D)
    w_in = params["in_proj_weight"].astype(jnp.float32)
    b_in = params["in_proj_bias"].astype(jnp.float32)
    w_q, w_k, w_v = jnp.split(w_in, 3, axis=0)
    b_q, b_k, b_v = jnp.split(b_in, 3, axis=0)
    qp = q @ w_q.T + b_q
    kp = k @ w_k.T + b_k
    vp = v @ w_v.T + b_v
    qh = qp.reshape(B, Sq, H, D).transpose(0, 2, 1, 3)
    kh = kp.reshape(B, Sk, H, D).transpose(0, 2, 1, 3)
    vh = vp.reshape(B, Sk, H, D).transpose(0, 2, 1, 3)
    s = jnp.einsum("bhqd,bhkd->bhqk", qh, kh) * scale
    p = jax.nn.softmax(s, axis=-1)
    ctx = jnp.einsum("bhqk,bhkd->bhqd", p, vh)
    ctx = ctx.transpose(0, 2, 1, 3).reshape(B, Sq, E)
    return ctx @ params["out_proj_weight"].T.astype(jnp.float32) + \
        params["out_proj_bias"].astype(jnp.float32)


# ----------------------------------------------------------------------------
# Deterministic parameter init (mirrors FlashMHA.__init__ / _reset_parameters)
# ----------------------------------------------------------------------------

def init_params(key, embed_dim):
    k1, k2 = jax.random.split(key)
    # xavier_uniform for in_proj_weight: bound = sqrt(6 / (fan_in + fan_out))
    bound_in = math.sqrt(6.0 / (embed_dim + 3 * embed_dim))
    in_proj_weight = jax.random.uniform(
        k1, (3 * embed_dim, embed_dim), jnp.float32, -bound_in, bound_in)
    in_proj_bias = jnp.zeros((3 * embed_dim,), jnp.float32)
    # nn.Linear default init for out_proj.weight
    bound_out = 1.0 / math.sqrt(embed_dim)
    out_proj_weight = jax.random.uniform(
        k2, (embed_dim, embed_dim), jnp.float32, -bound_out, bound_out)
    out_proj_bias = jnp.zeros((embed_dim,), jnp.float32)   # constant_(..., 0.)
    return {
        "in_proj_weight": in_proj_weight,
        "in_proj_bias": in_proj_bias,
        "out_proj_weight": out_proj_weight,
        "out_proj_bias": out_proj_bias,
    }


if __name__ == "__main__":
    # Small shapes consistent with FlashMHA constraints:
    # head_dim % 8 == 0 and head_dim <= 128  ->  embed_dim=32, num_heads=4, head_dim=8
    B, S, E, H = 2, 8, 32, 4

    key = jax.random.PRNGKey(0)
    kq, kk, kv_, kp = jax.random.split(key, 4)
    q = jax.random.normal(kq, (B, S, E), jnp.float32)
    k = jax.random.normal(kk, (B, S, E), jnp.float32)
    v = jax.random.normal(kv_, (B, S, E), jnp.float32)
    params = init_params(kp, E)

    out, attn_weights = flash_mha_forward(q, k, v, params, num_heads=H)
    out = jax.block_until_ready(out)

    ref = flash_mha_reference(q, k, v, params, num_heads=H)
    assert out.shape == (B, S, E) and out.dtype == jnp.float32
    assert attn_weights is None
    err = float(jnp.max(jnp.abs(out - ref)))
    assert err < 5e-2, f"mismatch vs reference: {err}"

    print("KERNEL_OK")
</pallas_src>

<mosaic_0001>
module attributes {stable_mosaic.version = 11 : i64} {
  func.func @_fused_mha_kernel(%arg0: i32, %arg1: i32, %arg2: memref<1x8x32xbf16, #tpu.memory_space<vmem>>, %arg3: memref<1x8x32xbf16, #tpu.memory_space<vmem>>, %arg4: memref<1x8x32xbf16, #tpu.memory_space<vmem>>, %arg5: memref<3x32x32xbf16, #tpu.memory_space<vmem>>, %arg6: memref<3x1x32xf32, #tpu.memory_space<vmem>>, %arg7: memref<32x32xbf16, #tpu.memory_space<vmem>>, %arg8: memref<1x32xf32, #tpu.memory_space<vmem>>, %arg9: memref<1x8x32xf32, #tpu.memory_space<vmem>>, %arg10: memref<8x32xbf16, #tpu.memory_space<vmem>>, %arg11: memref<4x8x1xf32, #tpu.memory_space<vmem>>, %arg12: memref<4x8x1xf32, #tpu.memory_space<vmem>>, %arg13: memref<4x8x8xf32, #tpu.memory_space<vmem>>) attributes {dimension_semantics = [#tpu.dimension_semantics<parallel>, #tpu.dimension_semantics<arbitrary>], iteration_bounds = array<i64: 2, 1>, scalar_prefetch = 0 : i64, scratch_operands = 4 : i64, tpu.core_type = #tpu.core_type<tc>, window_params = [{transform_indices = @transform_0, window_bounds = array<i64: 1, 8, 32>}, {transform_indices = @transform_1, window_bounds = array<i64: 1, 8, 32>}, {transform_indices = @transform_2, window_bounds = array<i64: 1, 8, 32>}, {pipeline_mode = #tpu.pipeline_mode<synchronous>, transform_indices = @transform_3, window_bounds = array<i64: 3, 32, 32>}, {pipeline_mode = #tpu.pipeline_mode<synchronous>, transform_indices = @transform_4, window_bounds = array<i64: 3, 1, 32>}, {pipeline_mode = #tpu.pipeline_mode<synchronous>, transform_indices = @transform_5, window_bounds = array<i64: 32, 32>}, {pipeline_mode = #tpu.pipeline_mode<synchronous>, transform_indices = @transform_6, window_bounds = array<i64: 1, 32>}, {transform_indices = @transform_7, window_bounds = array<i64: 1, 8, 32>}]} {
    %c0_i32 = arith.constant 0 : i32
    %0 = arith.cmpi eq, %arg1, %c0_i32 : i32
    %1 = arith.extui %0 : i1 to i32
    %c0_i32_0 = arith.constant 0 : i32
    %2 = arith.cmpi ne, %1, %c0_i32_0 : i32
    scf.if %2 {
      %c0_108 = arith.constant 0 : index
      %c0_109 = arith.constant 0 : index
      %c0_110 = arith.constant 0 : index
      %171 = vector.load %arg2[%c0_108, %c0_109, %c0_110] : memref<1x8x32xbf16, #tpu.memory_space<vmem>>, vector<1x8x32xbf16>
      %172 = vector.shape_cast %171 : vector<1x8x32xbf16> to vector<8x32xbf16>
      %c0_111 = arith.constant 0 : index
      %c0_112 = arith.constant 0 : index
      %c0_113 = arith.constant 0 : index
      %173 = vector.load %arg5[%c0_111, %c0_112, %c0_113] : memref<3x32x32xbf16, #tpu.memory_space<vmem>>, vector<1x32x32xbf16>
      %174 = vector.shape_cast %173 : vector<1x32x32xbf16> to vector<32x32xbf16>
      %cst_114 = arith.constant dense<0.000000e+00> : vector<8x32xf32>
      %175 = tpu.matmul %172, %174, %cst_114 {dimension_numbers = #tpu.dot_dimension_numbers<[1], [0], [0], [1], [0, 0, 1, 1], [], []>} : vector<8x32xbf16>, vector<32x32xbf16>, vector<8x32xf32> -> vector<8x32xf32>
      %c0_115 = arith.constant 0 : index
      %c0_116 = arith.constant 0 : index
      %c0_117 = arith.constant 0 : index
      %176 = vector.load %arg6[%c0_115, %c0_116, %c0_117] : memref<3x1x32xf32, #tpu.memory_space<vmem>>, vector<1x1x32xf32>
      %177 = vector.shape_cast %176 : vector<1x1x32xf32> to vector<1x32xf32>
      %178 = vector.broadcast %177 : vector<1x32xf32> to vector<8x32xf32>
      %179 = arith.addf %175, %178 : vector<8x32xf32>
      %180 = arith.truncf %179 : vector<8x32xf32> to vector<8x32xbf16>
      %c0_118 = arith.constant 0 : index
      %c0_119 = arith.constant 0 : index
      %181 = vector.load %arg10[%c0_118, %c0_119] : memref<8x32xbf16, #tpu.memory_space<vmem>>, vector<8x32xbf16>
      tpu.vector_store %arg10[%c0_118, %c0_119], %180 {strides = array<i32>} : memref<8x32xbf16, #tpu.memory_space<vmem>>, vector<8x32xbf16>,
      %cst_120 = arith.constant 0xFF800000 : f32
      %182 = vector.broadcast %cst_120 : f32 to vector<4x8x1xf32>
      %c0_121 = arith.constant 0 : index
      %c0_122 = arith.constant 0 : index
      %c0_123 = arith.constant 0 : index
      %183 = vector.load %arg11[%c0_121, %c0_122, %c0_123] : memref<4x8x1xf32, #tpu.memory_space<vmem>>, vector<4x8x1xf32>
      tpu.vector_store %arg11[%c0_121, %c0_122, %c0_123], %182 {strides = array<i32>} : memref<4x8x1xf32, #tpu.memory_space<vmem>>, vector<4x8x1xf32>,
      %cst_124 = arith.constant 0.000000e+00 : f32
      %184 = vector.broadcast %cst_124 : f32 to vector<4x8x1xf32>
      %c0_125 = arith.constant 0 : index
      %c0_126 = arith.constant 0 : index
      %c0_127 = arith.constant 0 : index
      %185 = vector.load %arg12[%c0_125, %c0_126, %c0_127] : memref<4x8x1xf32, #tpu.memory_space<vmem>>, vector<4x8x1xf32>
      tpu.vector_store %arg12[%c0_125, %c0_126, %c0_127], %184 {strides = array<i32>} : memref<4x8x1xf32, #tpu.memory_space<vmem>>, vector<4x8x1xf32>,
      %cst_128 = arith.constant 0.000000e+00 : f32
      %186 = vector.broadcast %cst_128 : f32 to vector<4x8x8xf32>
      %c0_129 = arith.constant 0 : index
      %c0_130 = arith.constant 0 : index
      %c0_131 = arith.constant 0 : index
      %187 = vector.load %arg13[%c0_129, %c0_130, %c0_131] : memref<4x8x8xf32, #tpu.memory_space<vmem>>, vector<4x8x8xf32>
      tpu.vector_store %arg13[%c0_129, %c0_130, %c0_131], %186 {strides = array<i32>} : memref<4x8x8xf32, #tpu.memory_space<vmem>>, vector<4x8x8xf32>,
    } else {
    }
    %c0 = arith.constant 0 : index
    %c0_1 = arith.constant 0 : index
    %c0_2 = arith.constant 0 : index
    %3 = vector.load %arg3[%c0, %c0_1, %c0_2] : memref<1x8x32xbf16, #tpu.memory_space<vmem>>, vector<1x8x32xbf16>
    %4 = vector.shape_cast %3 : vector<1x8x32xbf16> to vector<8x32xbf16>
    %c1 = arith.constant 1 : index
    %c0_3 = arith.constant 0 : index
    %c0_4 = arith.constant 0 : index
    %5 = vector.load %arg5[%c1, %c0_3, %c0_4] : memref<3x32x32xbf16, #tpu.memory_space<vmem>>, vector<1x32x32xbf16>
    %6 = vector.shape_cast %5 : vector<1x32x32xbf16> to vector<32x32xbf16>
    %cst = arith.constant dense<0.000000e+00> : vector<8x32xf32>
    %7 = tpu.matmul %4, %6, %cst {dimension_numbers = #tpu.dot_dimension_numbers<[1], [0], [0], [1], [0, 0, 1, 1], [], []>} : vector<8x32xbf16>, vector<32x32xbf16>, vector<8x32xf32> -> vector<8x32xf32>
    %c1_5 = arith.constant 1 : index
    %c0_6 = arith.constant 0 : index
    %c0_7 = arith.constant 0 : index
    %8 = vector.load %arg6[%c1_5, %c0_6, %c0_7] : memref<3x1x32xf32, #tpu.memory_space<vmem>>, vector<1x1x32xf32>
    %9 = vector.shape_cast %8 : vector<1x1x32xf32> to vector<1x32xf32>
    %10 = vector.broadcast %9 : vector<1x32xf32> to vector<8x32xf32>
    %11 = arith.addf %7, %10 : vector<8x32xf32>
    %12 = arith.truncf %11 : vector<8x32xf32> to vector<8x32xbf16>
    %c0_8 = arith.constant 0 : index
    %c0_9 = arith.constant 0 : index
    %c0_10 = arith.constant 0 : index
    %13 = vector.load %arg4[%c0_8, %c0_9, %c0_10] : memref<1x8x32xbf16, #tpu.memory_space<vmem>>, vector<1x8x32xbf16>
    %14 = vector.shape_cast %13 : vector<1x8x32xbf16> to vector<8x32xbf16>
    %c2 = arith.constant 2 : index
    %c0_11 = arith.constant 0 : index
    %c0_12 = arith.constant 0 : index
    %15 = vector.load %arg5[%c2, %c0_11, %c0_12] : memref<3x32x32xbf16, #tpu.memory_space<vmem>>, vector<1x32x32xbf16>
    %16 = vector.shape_cast %15 : vector<1x32x32xbf16> to vector<32x32xbf16>
    %cst_13 = arith.constant dense<0.000000e+00> : vector<8x32xf32>
    %17 = tpu.matmul %14, %16, %cst_13 {dimension_numbers = #tpu.dot_dimension_numbers<[1], [0], [0], [1], [0, 0, 1, 1], [], []>} : vector<8x32xbf16>, vector<32x32xbf16>, vector<8x32xf32> -> vector<8x32xf32>
    %c2_14 = arith.constant 2 : index
    %c0_15 = arith.constant 0 : index
    %c0_16 = arith.constant 0 : index
    %18 = vector.load %arg6[%c2_14, %c0_15, %c0_16] : memref<3x1x32xf32, #tpu.memory_space<vmem>>, vector<1x1x32xf32>
    %19 = vector.shape_cast %18 : vector<1x1x32xf32> to vector<1x32xf32>
    %20 = vector.broadcast %19 : vector<1x32xf32> to vector<8x32xf32>
    %21 = arith.addf %17, %20 : vector<8x32xf32>
    %22 = arith.truncf %21 : vector<8x32xf32> to vector<8x32xbf16>
    %c0_17 = arith.constant 0 : index
    %c0_18 = arith.constant 0 : index
    %23 = vector.load %arg10[%c0_17, %c0_18] : memref<8x32xbf16, #tpu.memory_space<vmem>>, vector<8x32xbf16>
    %24 = vector.extract_strided_slice %23 {offsets = [0, 0], sizes = [8, 8], strides = [1, 1]} : vector<8x32xbf16> to vector<8x8xbf16>
    %25 = vector.extract_strided_slice %12 {offsets = [0, 0], sizes = [8, 8], strides = [1, 1]} : vector<8x32xbf16> to vector<8x8xbf16>
    %26 = vector.extract_strided_slice %22 {offsets = [0, 0], sizes = [8, 8], strides = [1, 1]} : vector<8x32xbf16> to vector<8x8xbf16>
    %cst_19 = arith.constant dense<0.000000e+00> : vector<8x8xf32>
    %27 = tpu.matmul %24, %25, %cst_19 {dimension_numbers = #tpu.dot_dimension_numbers<[1], [1], [0], [0], [0, 0, 1, 0], [], []>} : vector<8x8xbf16>, vector<8x8xbf16>, vector<8x8xf32> -> vector<8x8xf32>
    %c0_20 = arith.constant 0 : index
    %c0_21 = arith.constant 0 : index
    %c0_22 = arith.constant 0 : index
    %28 = vector.load %arg11[%c0_20, %c0_21, %c0_22] : memref<4x8x1xf32, #tpu.memory_space<vmem>>, vector<1x8x1xf32>
    %29 = vector.shape_cast %28 : vector<1x8x1xf32> to vector<8x1xf32>
    %cst_23 = arith.constant dense<0xFF800000> : vector<8xf32>
    %30 = vector.multi_reduction <maximumf>, %27, %cst_23 [1] : vector<8x8xf32> to vector<8xf32>
    %31 = vector.shape_cast %30 : vector<8xf32> to vector<8x1xf32>
    %32 = arith.maximumf %29, %31 : vector<8x1xf32>
    %33 = arith.subf %29, %32 : vector<8x1xf32>
    %34 = math.exp %33 : vector<8x1xf32>
    %35 = vector.broadcast %32 : vector<8x1xf32> to vector<8x8xf32>
    %36 = arith.subf %27, %35 : vector<8x8xf32>
    %37 = math.exp %36 : vector<8x8xf32>
    %c0_24 = arith.constant 0 : index
    %c0_25 = arith.constant 0 : index
    %c0_26 = arith.constant 0 : index
    %38 = vector.load %arg12[%c0_24, %c0_25, %c0_26] : memref<4x8x1xf32, #tpu.memory_space<vmem>>, vector<1x8x1xf32>
    %39 = vector.shape_cast %38 : vector<1x8x1xf32> to vector<8x1xf32>
    %40 = arith.mulf %34, %39 : vector<8x1xf32>
    %cst_27 = arith.constant dense<0.000000e+00> : vector<8xf32>
    %41 = vector.multi_reduction <add>, %37, %cst_27 [1] : vector<8x8xf32> to vector<8xf32>
    %42 = vector.shape_cast %41 : vector<8xf32> to vector<8x1xf32>
    %43 = arith.addf %40, %42 : vector<8x1xf32>
    %c0_28 = arith.constant 0 : index
    %c0_29 = arith.constant 0 : index
    %c0_30 = arith.constant 0 : index
    %44 = vector.load %arg12[%c0_28, %c0_29, %c0_30] : memref<4x8x1xf32, #tpu.memory_space<vmem>>, vector<1x8x1xf32>
    %45 = vector.shape_cast %44 : vector<1x8x1xf32> to vector<8x1xf32>
    %46 = vector.shape_cast %43 : vector<8x1xf32> to vector<1x8x1xf32>
    tpu.vector_store %arg12[%c0_28, %c0_29, %c0_30], %46 {strides = array<i32>} : memref<4x8x1xf32, #tpu.memory_space<vmem>>, vector<1x8x1xf32>,
    %c0_31 = arith.constant 0 : index
    %c0_32 = arith.constant 0 : index
    %c0_33 = arith.constant 0 : index
    %47 = vector.load %arg13[%c0_31, %c0_32, %c0_33] : memref<4x8x8xf32, #tpu.memory_space<vmem>>, vector<1x8x8xf32>
    %48 = vector.shape_cast %47 : vector<1x8x8xf32> to vector<8x8xf32>
    %49 = vector.broadcast %34 : vector<8x1xf32> to vector<8x8xf32>
    %50 = arith.mulf %49, %48 : vector<8x8xf32>
    %51 = arith.truncf %37 : vector<8x8xf32> to vector<8x8xbf16>
    %cst_34 = arith.constant dense<0.000000e+00> : vector<8x8xf32>
    %52 = tpu.matmul %51, %26, %cst_34 {dimension_numbers = #tpu.dot_dimension_numbers<[1], [0], [0], [1], [0, 0, 1, 1], [], []>} : vector<8x8xbf16>, vector<8x8xbf16>, vector<8x8xf32> -> vector<8x8xf32>
    %53 = arith.addf %50, %52 : vector<8x8xf32>
    %c0_35 = arith.constant 0 : index
    %c0_36 = arith.constant 0 : index
    %c0_37 = arith.constant 0 : index
    %54 = vector.load %arg13[%c0_35, %c0_36, %c0_37] : memref<4x8x8xf32, #tpu.memory_space<vmem>>, vector<1x8x8xf32>
    %55 = vector.shape_cast %54 : vector<1x8x8xf32> to vector<8x8xf32>
    %56 = vector.shape_cast %53 : vector<8x8xf32> to vector<1x8x8xf32>
    tpu.vector_store %arg13[%c0_35, %c0_36, %c0_37], %56 {strides = array<i32>} : memref<4x8x8xf32, #tpu.memory_space<vmem>>, vector<1x8x8xf32>,
    %c0_38 = arith.constant 0 : index
    %c0_39 = arith.constant 0 : index
    %c0_40 = arith.constant 0 : index
    %57 = vector.load %arg11[%c0_38, %c0_39, %c0_40] : memref<4x8x1xf32, #tpu.memory_space<vmem>>, vector<1x8x1xf32>
    %58 = vector.shape_cast %57 : vector<1x8x1xf32> to vector<8x1xf32>
    %59 = vector.shape_cast %32 : vector<8x1xf32> to vector<1x8x1xf32>
    tpu.vector_store %arg11[%c0_38, %c0_39, %c0_40], %59 {strides = array<i32>} : memref<4x8x1xf32, #tpu.memory_space<vmem>>, vector<1x8x1xf32>,
    %60 = vector.extract_strided_slice %23 {offsets = [0, 8], sizes = [8, 8], strides = [1, 1]} : vector<8x32xbf16> to vector<8x8xbf16>
    %61 = vector.extract_strided_slice %12 {offsets = [0, 8], sizes = [8, 8], strides = [1, 1]} : vector<8x32xbf16> to vector<8x8xbf16>
    %62 = vector.extract_strided_slice %22 {offsets = [0, 8], sizes = [8, 8], strides = [1, 1]} : vector<8x32xbf16> to vector<8x8xbf16>
    %cst_41 = arith.constant dense<0.000000e+00> : vector<8x8xf32>
    %63 = tpu.matmul %60, %61, %cst_41 {dimension_numbers = #tpu.dot_dimension_numbers<[1], [1], [0], [0], [0, 0, 1, 0], [], []>} : vector<8x8xbf16>, vector<8x8xbf16>, vector<8x8xf32> -> vector<8x8xf32>
    %c1_42 = arith.constant 1 : index
    %c0_43 = arith.constant 0 : index
    %c0_44 = arith.constant 0 : index
    %64 = vector.load %arg11[%c1_42, %c0_43, %c0_44] : memref<4x8x1xf32, #tpu.memory_space<vmem>>, vector<1x8x1xf32>
    %65 = vector.shape_cast %64 : vector<1x8x1xf32> to vector<8x1xf32>
    %cst_45 = arith.constant dense<0xFF800000> : vector<8xf32>
    %66 = vector.multi_reduction <maximumf>, %63, %cst_45 [1] : vector<8x8xf32> to vector<8xf32>
    %67 = vector.shape_cast %66 : vector<8xf32> to vector<8x1xf32>
    %68 = arith.maximumf %65, %67 : vector<8x1xf32>
    %69 = arith.subf %65, %68 : vector<8x1xf32>
    %70 = math.exp %69 : vector<8x1xf32>
    %71 = vector.broadcast %68 : vector<8x1xf32> to vector<8x8xf32>
    %72 = arith.subf %63, %71 : vector<8x8xf32>
    %73 = math.exp %72 : vector<8x8xf32>
    %c1_46 = arith.constant 1 : index
    %c0_47 = arith.constant 0 : index
    %c0_48 = arith.constant 0 : index
    %74 = vector.load %arg12[%c1_46, %c0_47, %c0_48] : memref<4x8x1xf32, #tpu.memory_space<vmem>>, vector<1x8x1xf32>
    %75 = vector.shape_cast %74 : vector<1x8x1xf32> to vector<8x1xf32>
    %76 = arith.mulf %70, %75 : vector<8x1xf32>
    %cst_49 = arith.constant dense<0.000000e+00> : vector<8xf32>
    %77 = vector.multi_reduction <add>, %73, %cst_49 [1] : vector<8x8xf32> to vector<8xf32>
    %78 = vector.shape_cast %77 : vector<8xf32> to vector<8x1xf32>
    %79 = arith.addf %76, %78 : vector<8x1xf32>
    %c1_50 = arith.constant 1 : index
    %c0_51 = arith.constant 0 : index
    %c0_52 = arith.constant 0 : index
    %80 = vector.load %arg12[%c1_50, %c0_51, %c0_52] : memref<4x8x1xf32, #tpu.memory_space<vmem>>, vector<1x8x1xf32>
    %81 = vector.shape_cast %80 : vector<1x8x1xf32> to vector<8x1xf32>
    %82 = vector.shape_cast %79 : vector<8x1xf32> to vector<1x8x1xf32>
    tpu.vector_store %arg12[%c1_50, %c0_51, %c0_52], %82 {strides = array<i32>} : memref<4x8x1xf32, #tpu.memory_space<vmem>>, vector<1x8x1xf32>,
    %c1_53 = arith.constant 1 : index
    %c0_54 = arith.constant 0 : index
    %c0_55 = arith.constant 0 : index
    %83 = vector.load %arg13[%c1_53, %c0_54, %c0_55] : memref<4x8x8xf32, #tpu.memory_space<vmem>>, vector<1x8x8xf32>
    %84 = vector.shape_cast %83 : vector<1x8x8xf32> to vector<8x8xf32>
    %85 = vector.broadcast %70 : vector<8x1xf32> to vector<8x8xf32>
    %86 = arith.mulf %85, %84 : vector<8x8xf32>
    %87 = arith.truncf %73 : vector<8x8xf32> to vector<8x8xbf16>
    %cst_56 = arith.constant dense<0.000000e+00> : vector<8x8xf32>
    %88 = tpu.matmul %87, %62, %cst_56 {dimension_numbers = #tpu.dot_dimension_numbers<[1], [0], [0], [1], [0, 0, 1, 1], [], []>} : vector<8x8xbf16>, vector<8x8xbf16>, vector<8x8xf32> -> vector<8x8xf32>
    %89 = arith.addf %86, %88 : vector<8x8xf32>
    %c1_57 = arith.constant 1 : index
    %c0_58 = arith.constant 0 : index
    %c0_59 = arith.constant 0 : index
    %90 = vector.load %arg13[%c1_57, %c0_58, %c0_59] : memref<4x8x8xf32, #tpu.memory_space<vmem>>, vector<1x8x8xf32>
    %91 = vector.shape_cast %90 : vector<1x8x8xf32> to vector<8x8xf32>
    %92 = vector.shape_cast %89 : vector<8x8xf32> to vector<1x8x8xf32>
    tpu.vector_store %arg13[%c1_57, %c0_58, %c0_59], %92 {strides = array<i32>} : memref<4x8x8xf32, #tpu.memory_space<vmem>>, vector<1x8x8xf32>,
    %c1_60 = arith.constant 1 : index
    %c0_61 = arith.constant 0 : index
    %c0_62 = arith.constant 0 : index
    %93 = vector.load %arg11[%c1_60, %c0_61, %c0_62] : memref<4x8x1xf32, #tpu.memory_space<vmem>>, vector<1x8x1xf32>
    %94 = vector.shape_cast %93 : vector<1x8x1xf32> to vector<8x1xf32>
    %95 = vector.shape_cast %68 : vector<8x1xf32> to vector<1x8x1xf32>
    tpu.vector_store %arg11[%c1_60, %c0_61, %c0_62], %95 {strides = array<i32>} : memref<4x8x1xf32, #tpu.memory_space<vmem>>, vector<1x8x1xf32>,
    %96 = vector.extract_strided_slice %23 {offsets = [0, 16], sizes = [8, 8], strides = [1, 1]} : vector<8x32xbf16> to vector<8x8xbf16>
    %97 = vector.extract_strided_slice %12 {offsets = [0, 16], sizes = [8, 8], strides = [1, 1]} : vector<8x32xbf16> to vector<8x8xbf16>
    %98 = vector.extract_strided_slice %22 {offsets = [0, 16], sizes = [8, 8], strides = [1, 1]} : vector<8x32xbf16> to vector<8x8xbf16>
    %cst_63 = arith.constant dense<0.000000e+00> : vector<8x8xf32>
    %99 = tpu.matmul %96, %97, %cst_63 {dimension_numbers = #tpu.dot_dimension_numbers<[1], [1], [0], [0], [0, 0, 1, 0], [], []>} : vector<8x8xbf16>, vector<8x8xbf16>, vector<8x8xf32> -> vector<8x8xf32>
    %c2_64 = arith.constant 2 : index
    %c0_65 = arith.constant 0 : index
    %c0_66 = arith.constant 0 : index
    %100 = vector.load %arg11[%c2_64, %c0_65, %c0_66] : memref<4x8x1xf32, #tpu.memory_space<vmem>>, vector<1x8x1xf32>
    %101 = vector.shape_cast %100 : vector<1x8x1xf32> to vector<8x1xf32>
    %cst_67 = arith.constant dense<0xFF800000> : vector<8xf32>
    %102 = vector.multi_reduction <maximumf>, %99, %cst_67 [1] : vector<8x8xf32> to vector<8xf32>
    %103 = vector.shape_cast %102 : vector<8xf32> to vector<8x1xf32>
    %104 = arith.maximumf %101, %103 : vector<8x1xf32>
    %105 = arith.subf %101, %104 : vector<8x1xf32>
    %106 = math.exp %105 : vector<8x1xf32>
    %107 = vector.broadcast %104 : vector<8x1xf32> to vector<8x8xf32>
    %108 = arith.subf %99, %107 : vector<8x8xf32>
    %109 = math.exp %108 : vector<8x8xf32>
    %c2_68 = arith.constant 2 : index
    %c0_69 = arith.constant 0 : index
    %c0_70 = arith.constant 0 : index
    %110 = vector.load %arg12[%c2_68, %c0_69, %c0_70] : memref<4x8x1xf32, #tpu.memory_space<vmem>>, vector<1x8x1xf32>
    %111 = vector.shape_cast %110 : vector<1x8x1xf32> to vector<8x1xf32>
    %112 = arith.mulf %106, %111 : vector<8x1xf32>
    %cst_71 = arith.constant dense<0.000000e+00> : vector<8xf32>
    %113 = vector.multi_reduction <add>, %109, %cst_71 [1] : vector<8x8xf32> to vector<8xf32>
    %114 = vector.shape_cast %113 : vector<8xf32> to vector<8x1xf32>
    %115 = arith.addf %112, %114 : vector<8x1xf32>
    %c2_72 = arith.constant 2 : index
    %c0_73 = arith.constant 0 : index
    %c0_74 = arith.constant 0 : index
    %116 = vector.load %arg12[%c2_72, %c0_73, %c0_74] : memref<4x8x1xf32, #tpu.memory_space<vmem>>, vector<1x8x1xf32>
    %117 = vector.shape_cast %116 : vector<1x8x1xf32> to vector<8x1xf32>
    %118 = vector.shape_cast %115 : vector<8x1xf32> to vector<1x8x1xf32>
    tpu.vector_store %arg12[%c2_72, %c0_73, %c0_74], %118 {strides = array<i32>} : memref<4x8x1xf32, #tpu.memory_space<vmem>>, vector<1x8x1xf32>,
    %c2_75 = arith.constant 2 : index
    %c0_76 = arith.constant 0 : index
    %c0_77 = arith.constant 0 : index
    %119 = vector.load %arg13[%c2_75, %c0_76, %c0_77] : memref<4x8x8xf32, #tpu.memory_space<vmem>>, vector<1x8x8xf32>
    %120 = vector.shape_cast %119 : vector<1x8x8xf32> to vector<8x8xf32>
    %121 = vector.broadcast %106 : vector<8x1xf32> to vector<8x8xf32>
    %122 = arith.mulf %121, %120 : vector<8x8xf32>
    %123 = arith.truncf %109 : vector<8x8xf32> to vector<8x8xbf16>
    %cst_78 = arith.constant dense<0.000000e+00> : vector<8x8xf32>
    %124 = tpu.matmul %123, %98, %cst_78 {dimension_numbers = #tpu.dot_dimension_numbers<[1], [0], [0], [1], [0, 0, 1, 1], [], []>} : vector<8x8xbf16>, vector<8x8xbf16>, vector<8x8xf32> -> vector<8x8xf32>
    %125 = arith.addf %122, %124 : vector<8x8xf32>
    %c2_79 = arith.constant 2 : index
    %c0_80 = arith.constant 0 : index
    %c0_81 = arith.constant 0 : index
    %126 = vector.load %arg13[%c2_79, %c0_80, %c0_81] : memref<4x8x8xf32, #tpu.memory_space<vmem>>, vector<1x8x8xf32>
    %127 = vector.shape_cast %126 : vector<1x8x8xf32> to vector<8x8xf32>
    %128 = vector.shape_cast %125 : vector<8x8xf32> to vector<1x8x8xf32>
    tpu.vector_store %arg13[%c2_79, %c0_80, %c0_81], %128 {strides = array<i32>} : memref<4x8x8xf32, #tpu.memory_space<vmem>>, vector<1x8x8xf32>,
    %c2_82 = arith.constant 2 : index
    %c0_83 = arith.constant 0 : index
    %c0_84 = arith.constant 0 : index
    %129 = vector.load %arg11[%c2_82, %c0_83, %c0_84] : memref<4x8x1xf32, #tpu.memory_space<vmem>>, vector<1x8x1xf32>
    %130 = vector.shape_cast %129 : vector<1x8x1xf32> to vector<8x1xf32>
    %131 = vector.shape_cast %104 : vector<8x1xf32> to vector<1x8x1xf32>
    tpu.vector_store %arg11[%c2_82, %c0_83, %c0_84], %131 {strides = array<i32>} : memref<4x8x1xf32, #tpu.memory_space<vmem>>, vector<1x8x1xf32>,
    %132 = vector.extract_strided_slice %23 {offsets = [0, 24], sizes = [8, 8], strides = [1, 1]} : vector<8x32xbf16> to vector<8x8xbf16>
    %133 = vector.extract_strided_slice %12 {offsets = [0, 24], sizes = [8, 8], strides = [1, 1]} : vector<8x32xbf16> to vector<8x8xbf16>
    %134 = vector.extract_strided_slice %22 {offsets = [0, 24], sizes = [8, 8], strides = [1, 1]} : vector<8x32xbf16> to vector<8x8xbf16>
    %cst_85 = arith.constant dense<0.000000e+00> : vector<8x8xf32>
    %135 = tpu.matmul %132, %133, %cst_85 {dimension_numbers = #tpu.dot_dimension_numbers<[1], [1], [0], [0], [0, 0, 1, 0], [], []>} : vector<8x8xbf16>, vector<8x8xbf16>, vector<8x8xf32> -> vector<8x8xf32>
    %c3 = arith.constant 3 : index
    %c0_86 = arith.constant 0 : index
    %c0_87 = arith.constant 0 : index
    %136 = vector.load %arg11[%c3, %c0_86, %c0_87] : memref<4x8x1xf32, #tpu.memory_space<vmem>>, vector<1x8x1xf32>
    %137 = vector.shape_cast %136 : vector<1x8x1xf32> to vector<8x1xf32>
    %cst_88 = arith.constant dense<0xFF800000> : vector<8xf32>
    %138 = vector.multi_reduction <maximumf>, %135, %cst_88 [1] : vector<8x8xf32> to vector<8xf32>
    %139 = vector.shape_cast %138 : vector<8xf32> to vector<8x1xf32>
    %140 = arith.maximumf %137, %139 : vector<8x1xf32>
    %141 = arith.subf %137, %140 : vector<8x1xf32>
    %142 = math.exp %141 : vector<8x1xf32>
    %143 = vector.broadcast %140 : vector<8x1xf32> to vector<8x8xf32>
    %144 = arith.subf %135, %143 : vector<8x8xf32>
    %145 = math.exp %144 : vector<8x8xf32>
    %c3_89 = arith.constant 3 : index
    %c0_90 = arith.constant 0 : index
    %c0_91 = arith.constant 0 : index
    %146 = vector.load %arg12[%c3_89, %c0_90, %c0_91] : memref<4x8x1xf32, #tpu.memory_space<vmem>>, vector<1x8x1xf32>
    %147 = vector.shape_cast %146 : vector<1x8x1xf32> to vector<8x1xf32>
    %148 = arith.mulf %142, %147 : vector<8x1xf32>
    %cst_92 = arith.constant dense<0.000000e+00> : vector<8xf32>
    %149 = vector.multi_reduction <add>, %145, %cst_92 [1] : vector<8x8xf32> to vector<8xf32>
    %150 = vector.shape_cast %149 : vector<8xf32> to vector<8x1xf32>
    %151 = arith.addf %148, %150 : vector<8x1xf32>
    %c3_93 = arith.constant 3 : index
    %c0_94 = arith.constant 0 : index
    %c0_95 = arith.constant 0 : index
    %152 = vector.load %arg12[%c3_93, %c0_94, %c0_95] : memref<4x8x1xf32, #tpu.memory_space<vmem>>, vector<1x8x1xf32>
    %153 = vector.shape_cast %152 : vector<1x8x1xf32> to vector<8x1xf32>
    %154 = vector.shape_cast %151 : vector<8x1xf32> to vector<1x8x1xf32>
    tpu.vector_store %arg12[%c3_93, %c0_94, %c0_95], %154 {strides = array<i32>} : memref<4x8x1xf32, #tpu.memory_space<vmem>>, vector<1x8x1xf32>,
    %c3_96 = arith.constant 3 : index
    %c0_97 = arith.constant 0 : index
    %c0_98 = arith.constant 0 : index
    %155 = vector.load %arg13[%c3_96, %c0_97, %c0_98] : memref<4x8x8xf32, #tpu.memory_space<vmem>>, vector<1x8x8xf32>
    %156 = vector.shape_cast %155 : vector<1x8x8xf32> to vector<8x8xf32>
    %157 = vector.broadcast %142 : vector<8x1xf32> to vector<8x8xf32>
    %158 = arith.mulf %157, %156 : vector<8x8xf32>
    %159 = arith.truncf %145 : vector<8x8xf32> to vector<8x8xbf16>
    %cst_99 = arith.constant dense<0.000000e+00> : vector<8x8xf32>
    %160 = tpu.matmul %159, %134, %cst_99 {dimension_numbers = #tpu.dot_dimension_numbers<[1], [0], [0], [1], [0, 0, 1, 1], [], []>} : vector<8x8xbf16>, vector<8x8xbf16>, vector<8x8xf32> -> vector<8x8xf32>
    %161 = arith.addf %158, %160 : vector<8x8xf32>
    %c3_100 = arith.constant 3 : index
    %c0_101 = arith.constant 0 : index
    %c0_102 = arith.constant 0 : index
    %162 = vector.load %arg13[%c3_100, %c0_101, %c0_102] : memref<4x8x8xf32, #tpu.memory_space<vmem>>, vector<1x8x8xf32>
    %163 = vector.shape_cast %162 : vector<1x8x8xf32> to vector<8x8xf32>
    %164 = vector.shape_cast %161 : vector<8x8xf32> to vector<1x8x8xf32>
    tpu.vector_store %arg13[%c3_100, %c0_101, %c0_102], %164 {strides = array<i32>} : memref<4x8x8xf32, #tpu.memory_space<vmem>>, vector<1x8x8xf32>,
    %c3_103 = arith.constant 3 : index
    %c0_104 = arith.constant 0 : index
    %c0_105 = arith.constant 0 : index
    %165 = vector.load %arg11[%c3_103, %c0_104, %c0_105] : memref<4x8x1xf32, #tpu.memory_space<vmem>>, vector<1x8x1xf32>
    %166 = vector.shape_cast %165 : vector<1x8x1xf32> to vector<8x1xf32>
    %167 = vector.shape_cast %140 : vector<8x1xf32> to vector<1x8x1xf32>
    tpu.vector_store %arg11[%c3_103, %c0_104, %c0_105], %167 {strides = array<i32>} : memref<4x8x1xf32, #tpu.memory_space<vmem>>, vector<1x8x1xf32>,
    %c0_i32_106 = arith.constant 0 : i32
    %168 = arith.cmpi eq, %arg1, %c0_i32_106 : i32
    %169 = arith.extui %168 : i1 to i32
    %c0_i32_107 = arith.constant 0 : i32
    %170 = arith.cmpi ne, %169, %c0_i32_107 : i32
    scf.if %170 {
      %c0_108 = arith.constant 0 : index
      %c0_109 = arith.constant 0 : index
      %c0_110 = arith.constant 0 : index
      %171 = vector.load %arg12[%c0_108, %c0_109, %c0_110] : memref<4x8x1xf32, #tpu.memory_space<vmem>>, vector<1x8x1xf32>
      %172 = vector.shape_cast %171 : vector<1x8x1xf32> to vector<8x1xf32>
      %173 = tpu.reciprocal %172 {approx = true} : vector<8x1xf32> -> vector<8x1xf32>
      %c0_111 = arith.constant 0 : index
      %c0_112 = arith.constant 0 : index
      %c0_113 = arith.constant 0 : index
      %174 = vector.load %arg13[%c0_111, %c0_112, %c0_113] : memref<4x8x8xf32, #tpu.memory_space<vmem>>, vector<1x8x8xf32>
      %175 = vector.shape_cast %174 : vector<1x8x8xf32> to vector<8x8xf32>
      %176 = vector.broadcast %173 : vector<8x1xf32> to vector<8x8xf32>
      %177 = arith.mulf %175, %176 : vector<8x8xf32>
      %178 = arith.truncf %177 : vector<8x8xf32> to vector<8x8xbf16>
      %c1_114 = arith.constant 1 : index
      %c0_115 = arith.constant 0 : index
      %c0_116 = arith.constant 0 : index
      %179 = vector.load %arg12[%c1_114, %c0_115, %c0_116] : memref<4x8x1xf32, #tpu.memory_space<vmem>>, vector<1x8x1xf32>
      %180 = vector.shape_cast %179 : vector<1x8x1xf32> to vector<8x1xf32>
      %181 = tpu.reciprocal %180 {approx = true} : vector<8x1xf32> -> vector<8x1xf32>
      %c1_117 = arith.constant 1 : index
      %c0_118 = arith.constant 0 : index
      %c0_119 = arith.constant 0 : index
      %182 = vector.load %arg13[%c1_117, %c0_118, %c0_119] : memref<4x8x8xf32, #tpu.memory_space<vmem>>, vector<1x8x8xf32>
      %183 = vector.shape_cast %182 : vector<1x8x8xf32> to vector<8x8xf32>
      %184 = vector.broadcast %181 : vector<8x1xf32> to vector<8x8xf32>
      %185 = arith.mulf %183, %184 : vector<8x8xf32>
      %186 = arith.truncf %185 : vector<8x8xf32> to vector<8x8xbf16>
      %c2_120 = arith.constant 2 : index
      %c0_121 = arith.constant 0 : index
      %c0_122 = arith.constant 0 : index
      %187 = vector.load %arg12[%c2_120, %c0_121, %c0_122] : memref<4x8x1xf32, #tpu.memory_space<vmem>>, vector<1x8x1xf32>
      %188 = vector.shape_cast %187 : vector<1x8x1xf32> to vector<8x1xf32>
      %189 = tpu.reciprocal %188 {approx = true} : vector<8x1xf32> -> vector<8x1xf32>
      %c2_123 = arith.constant 2 : index
      %c0_124 = arith.constant 0 : index
      %c0_125 = arith.constant 0 : index
      %190 = vector.load %arg13[%c2_123, %c0_124, %c0_125] : memref<4x8x8xf32, #tpu.memory_space<vmem>>, vector<1x8x8xf32>
      %191 = vector.shape_cast %190 : vector<1x8x8xf32> to vector<8x8xf32>
      %192 = vector.broadcast %189 : vector<8x1xf32> to vector<8x8xf32>
      %193 = arith.mulf %191, %192 : vector<8x8xf32>
      %194 = arith.truncf %193 : vector<8x8xf32> to vector<8x8xbf16>
      %c3_126 = arith.constant 3 : index
      %c0_127 = arith.constant 0 : index
      %c0_128 = arith.constant 0 : index
      %195 = vector.load %arg12[%c3_126, %c0_127, %c0_128] : memref<4x8x1xf32, #tpu.memory_space<vmem>>, vector<1x8x1xf32>
      %196 = vector.shape_cast %195 : vector<1x8x1xf32> to vector<8x1xf32>
      %197 = tpu.reciprocal %196 {approx = true} : vector<8x1xf32> -> vector<8x1xf32>
      %c3_129 = arith.constant 3 : index
      %c0_130 = arith.constant 0 : index
      %c0_131 = arith.constant 0 : index
      %198 = vector.load %arg13[%c3_129, %c0_130, %c0_131] : memref<4x8x8xf32, #tpu.memory_space<vmem>>, vector<1x8x8xf32>
      %199 = vector.shape_cast %198 : vector<1x8x8xf32> to vector<8x8xf32>
      %200 = vector.broadcast %197 : vector<8x1xf32> to vector<8x8xf32>
      %201 = arith.mulf %199, %200 : vector<8x8xf32>
      %202 = arith.truncf %201 : vector<8x8xf32> to vector<8x8xbf16>
      %203 = tpu.concatenate %178, %186, %194, %202 in 1 : vector<8x8xbf16>, vector<8x8xbf16>, vector<8x8xbf16>, vector<8x8xbf16> -> vector<8x32xbf16>
      %c0_132 = arith.constant 0 : index
      %c0_133 = arith.constant 0 : index
      %204 = vector.load %arg7[%c0_132, %c0_133] : memref<32x32xbf16, #tpu.memory_space<vmem>>, vector<32x32xbf16>
      %cst_134 = arith.constant dense<0.000000e+00> : vector<8x32xf32>
      %205 = tpu.matmul %203, %204, %cst_134 {dimension_numbers = #tpu.dot_dimension_numbers<[1], [0], [0], [1], [0, 0, 1, 1], [], []>} : vector<8x32xbf16>, vector<32x32xbf16>, vector<8x32xf32> -> vector<8x32xf32>
      %c0_135 = arith.constant 0 : index
      %c0_136 = arith.constant 0 : index
      %206 = vector.load %arg8[%c0_135, %c0_136] : memref<1x32xf32, #tpu.memory_space<vmem>>, vector<1x32xf32>
      %207 = vector.broadcast %206 : vector<1x32xf32> to vector<8x32xf32>
      %208 = arith.addf %205, %207 : vector<8x32xf32>
      %c0_137 = arith.constant 0 : index
      %c0_138 = arith.constant 0 : index
      %c0_139 = arith.constant 0 : index
      %209 = vector.load %arg9[%c0_137, %c0_138, %c0_139] : memref<1x8x32xf32, #tpu.memory_space<vmem>>, vector<1x8x32xf32>
      %210 = vector.shape_cast %209 : vector<1x8x32xf32> to vector<8x32xf32>
      %211 = vector.shape_cast %208 : vector<8x32xf32> to vector<1x8x32xf32>
      tpu.vector_store %arg9[%c0_137, %c0_138, %c0_139], %211 {strides = array<i32>} : memref<1x8x32xf32, #tpu.memory_space<vmem>>, vector<1x8x32xf32>,
    } else {
    }
    return
  }
  func.func @transform_0(%arg0: i32, %arg1: i32) -> (i32, i32, i32) {
    %c0_i32 = arith.constant 0 : i32
    %c0_i32_0 = arith.constant 0 : i32
    %c0_i32_1 = arith.constant 0 : i32
    return %arg0, %c0_i32, %c0_i32_0 : i32, i32, i32
  }
  func.func @transform_1(%arg0: i32, %arg1: i32) -> (i32, i32, i32) {
    %c0_i32 = arith.constant 0 : i32
    %c0_i32_0 = arith.constant 0 : i32
    return %arg0, %arg1, %c0_i32 : i32, i32, i32
  }
  func.func @transform_2(%arg0: i32, %arg1: i32) -> (i32, i32, i32) {
    %c0_i32 = arith.constant 0 : i32
    %c0_i32_0 = arith.constant 0 : i32
    return %arg0, %arg1, %c0_i32 : i32, i32, i32
  }
  func.func @transform_3(%arg0: i32, %arg1: i32) -> (i32, i32, i32) {
    %c0_i32 = arith.constant 0 : i32
    %c0_i32_0 = arith.constant 0 : i32
    %c0_i32_1 = arith.constant 0 : i32
    %c0_i32_2 = arith.constant 0 : i32
    return %c0_i32, %c0_i32_0, %c0_i32_1 : i32, i32, i32
  }
  func.func @transform_4(%arg0: i32, %arg1: i32) -> (i32, i32, i32) {
    %c0_i32 = arith.constant 0 : i32
    %c0_i32_0 = arith.constant 0 : i32
    %c0_i32_1 = arith.constant 0 : i32
    %c0_i32_2 = arith.constant 0 : i32
    return %c0_i32, %c0_i32_0, %c0_i32_1 : i32, i32, i32
  }
  func.func @transform_5(%arg0: i32, %arg1: i32) -> (i32, i32) {
    %c0_i32 = arith.constant 0 : i32
    %c0_i32_0 = arith.constant 0 : i32
    %c0_i32_1 = arith.constant 0 : i32
    return %c0_i32, %c0_i32_0 : i32, i32
  }
  func.func @transform_6(%arg0: i32, %arg1: i32) -> (i32, i32) {
    %c0_i32 = arith.constant 0 : i32
    %c0_i32_0 = arith.constant 0 : i32
    %c0_i32_1 = arith.constant 0 : i32
    return %c0_i32, %c0_i32_0 : i32, i32
  }
  func.func @transform_7(%arg0: i32, %arg1: i32) -> (i32, i32, i32) {
    %c0_i32 = arith.constant 0 : i32
    %c0_i32_0 = arith.constant 0 : i32
    %c0_i32_1 = arith.constant 0 : i32
    return %arg0, %c0_i32, %c0_i32_0 : i32, i32, i32
  }
}

</mosaic_0001>

<bundles_post_ra>
// kernel: tpu_custom_call.1
= control target key start
LH: loop header
LB: loop body
LE: loop exit
PB: predicated region body
PF: predicated region fallthrough
CT: control target
= control target key end

     0   :  { %s2539_s0 = inlined_call_operand.hbm [shape: bf16[2,8,32], index: 0, kind: input, shape index: {}]   ;;  %s2540_s1 = inlined_call_operand.hbm [shape: bf16[2,8,32], index: 1, kind: input, shape index: {}]   ;;  %s2541_s2 = inlined_call_operand.hbm [shape: bf16[2,8,32], index: 2, kind: input, shape index: {}]   ;;  %s2542_s3 = inlined_call_operand.hbm [shape: bf16[3,32,32], index: 3, kind: input, shape index: {}]   ;;  %s2543_s4 = inlined_call_operand.hbm [shape: f32[3,1,32], index: 4, kind: input, shape index: {}]   ;;  %s2544_s5 = inlined_call_operand.vmem [shape: bf16[32,32], index: 5, kind: input, shape index: {}]   ;;  %s2545_s6 = inlined_call_operand.vmem [shape: f32[1,32], index: 6, kind: input, shape index: {}]   ;;  %s2546_s7 = inlined_call_operand.hbm [shape: f32[2,8,32], index: 7, kind: output, shape index: {}]  }
   0x1   :  { %2565 = sst [smem:[#allocation26_spill]] %s2540_s1 }
   0x2   :  { %2566 = sst [smem:[#allocation27_spill]] %s2542_s3 }
   0x3   :  { %12 = vsyncpa [#allocation7], 0 }
   0x4   :  { %14 = vsyncpa [#allocation7 + $0x1], 0 }
   0x5   :  { %15 = vsyncpa [#allocation10], 0 }
   0x6   :  { %17 = vsyncpa [#allocation10 + $0x1], 0 }
   0x7   :  { %18 = vsyncpa [#allocation13], 0 }
   0x8   :  { %19 = vsyncpa [#allocation8], 0 }
   0x9   :  { %21 = vsyncpa [#allocation8 + $0x1], 0  ;;  %s2062_s24 = smov 0   ;;  %s2064_s25 = smov 0  }
   0xa   :  { %s2066_s26 = smov 0   ;;  %s2068_s27 = smov 0  }
   0xb   :  { %s2070_s28 = smov 0   ;;  %s2072_s29 = smov 0  }
   0xc LB: > { %2567 = sst [smem:[#allocation20_spill]] %s1980_s24  ;;  %s2093_s30 = sadd.s32 4294967295, %s2000_s29   ;;  %s2000_s29 = sphi %s2072_s29, %s27_s29   ;;  %s1996_s28 = sphi %s2070_s28, %s2602_s28   ;;  %s1992_s27 = sphi %s2068_s27, %s2601_s27   ;;  %s1988_s26 = sphi %s2066_s26, %s2605_s26   ;;  %s1984_s25 = sphi %s2064_s25, %s2604_s25   ;;  %s1980_s24 = sphi %s2062_s24, %s2603_s24  }
   0xd   : > { %2568 = sst [smem:[#allocation21_spill]] %s1996_s28  ;;  %s1467_s8 = sadd.s32 4294967294, %s2000_s29  }
   0xe   : > { %2569 = sst [smem:[#allocation22_spill]] %s2000_s29  ;;  %p59_p0 = scmp.ne.s32.totalorder %s1984_s25, %s1980_s24 }
   0xf   : > { %p2547_p1 = scmp.eq.s32.totalorder %s2093_s30, 0  ;;  %p229_p3 = scmp.eq.s32.totalorder %s1467_s8, 1 }
  0x10   : > { %p1468_p5 = scmp.ge.s32.totalorder %s2000_s29, 1  ;;  %p236_p7 = scmp.lt.s32.totalorder %s2000_s29, 3 }
  0x11   : > { %p2102_p4 = por %p2547_p1, %p59_p0  ;;  %p2107_p6 = por %p229_p3, %p59_p0 }
  0x12   : > { %p2112_p8 = pnand %p1468_p5, %p236_p7  ;;  %s2002_s12 = smov [#allocation12]  }
  0x13   : > { %s2570_s9 = scalar_select %p2102_p4, 1, 0 }
  0x14   : > { %s2571_s10 = scalar_select %p2107_p6, 1, 0 }
  0x15   : > { %s2573_s11 = scalar_select %p2112_p8, 1, 0 }
  0x16   : > { %2572 = sst [smem:[#allocation23_spill]] %s2571_s10  ;;  %s248_s13 = sshll.u32 %s2002_s12, 4  ;;  %s249_s13 = int_to_ptr.vmem [resolvable:$true] %s248_s13 }
  0x17   : > { %p1638_p9 = pneg %p2112_p8  ;;  %s39_s15 = sadd.s32 1, %s1996_s28 }
  0x18   : > { %s2575_s3 = sld [smem:[#allocation27_spill]] }
  0x19   : > { %p2121_p11 = pnand %p1638_p9, %p2547_p1 }
  0x1b   : > { %s2574_s14 = scalar_select %p2121_p11, 1, 0 }
  0x1c   : > { %p2556_p13 = pneg %p2121_p11 }
  0x1e   : > { %s1764_s18 = scalar_lea.hbm %s2575_s3, 768 }
  0x1f   : > { %p1765_p12 = scmp.ne.s32.totalorder %s2575_s3, %s1764_s18  ;;  %p1771_p5 = scmp.lt.u32.totalorder %s1764_s18, %s2575_s3 }
  0x21   : > { %p1767_p0 = pnand %p2556_p13, %p1765_p12 }
  0x23   : > { %p1768_p3 = pneg %p1767_p0 }
  0x25   : > { %p1773_p7 = pnand %p1771_p5, %p1768_p3 }
  0x27   : > { %1776 = shalt.err (!%p1773_p7)
}
  0x28   : > { %s1777_s23 = scalar_lea.vmem %s249_s13, 768  ;;  %p1785_p2 = scmp.lt.s32.totalorder %s249_s13, %s249_s13 }
  0x29   : > { %p1778_p9 = scmp.ne.s32.totalorder %s249_s13, %s1777_s23  ;;  %p1786_p6 = scmp.lt.s32.totalorder %s1777_s23, %s1777_s23 }
  0x2b   : > { %p1780_p10 = pnand %p1778_p9, %p2556_p13  ;;  %p1787_p4 = por %p1786_p6, %p1785_p2 }
  0x2d   : > { %p1781_p1 = pneg %p1780_p10 }
  0x2f   : > { %p1788_p8 = pnand %p1787_p4, %p1781_p1 }
  0x31   : > { %1791 = shalt.err (!%p1788_p8)
}
  0x32   : > { %s2003_s8 = smov 64   ;;  %s2004_s12 = smov 4  }
  0x33   : > { %1641 = dma.hbm_to_vmem [thread:$0]  (!%p2121_p11), %s2575_s3, 768, %s249_s13, [#allocation13], %s2003_s8, %s2003_s8, %s2004_s12  }
  0x34   : > { %p41_p1 = scmp.ge.s32.totalorder %s39_s15, 2  ;;  %s46_s18 = sadd.s32 1, %s1988_s26 }
  0x35   : > { %p53_p2 = scmp.ne.s32.totalorder %s1988_s26, %s1984_s25  ;;  %p54_p4 = scmp.eq.s32.totalorder %s2000_s29, 0 }
  0x36   : > { %s2607_s15 = smov (%p41_p1, %s39_s15), 0  ;;  %p2577_p8 = scmp.eq.s32.totalorder %s2093_s30, 1 }
  0x37   : > { %2576 = sst [smem:[#allocation24_spill]] %s2607_s15  ;;  %p55_p6 = por %p54_p4, %p53_p2 }
  0x38   : > { %p2156_p10 = por %p2577_p8, %p53_p2  ;;  %s43_s20 = ssub.s32 %s1996_s28, %s2607_s15 }
  0x39   : > { %p1661_p12 = scmp.lt.s32.totalorder %s2000_s29, 2  ;;  %p44_p0 = scmp.eq.s32.totalorder %s43_s20, 0 }
  0x3a   : > { %s2578_s19 = scalar_select %p2156_p10, 1, 0 }
  0x3b   : > { %s2550_s21 = sand.u32 1, %s1988_s26   ;;  %s2169_s22 = sshll.u32 %s1996_s28, 6 }
  0x3c   : > { %s2166_s13 = sshll.u32 %s2550_s21, 2  ;;  %p2174_p3 = pnand %p1661_p12, %p55_p6 }
  0x3d   : > { %s2172_s23 = scalar_select %p44_p0, %s1988_s26, %s46_s18  }
  0x3e   : > { %s2580_s8 = scalar_select %p2174_p3, 1, 0 }
  0x3f   : > { %2579 = sst [smem:[#allocation25_spill]] %s2172_s23  ;;  %s299_s12 = sand.u32 1, %s2000_s29  }
  0x40   : > { %s2581_s1 = sld [smem:[#allocation26_spill]]  ;;  %s303_s21 = scalar_lea.vmem [#allocation9], %s2166_s13 }
  0x41   : > { %s311_s3 = sshll.u32 %s303_s21, 4  ;;  %s2005_s18 = smov [#allocation14]   ;;  %s2186_s3 = int_to_ptr.vmem [resolvable:$true] %s311_s3 }
  0x42   : > { %s2188_s15 = sshll.u32 %s2005_s18, 4  ;;  %s2190_s28 = scalar_lea.sflag [#allocation10], %s299_s12  ;;  %s262_s15 = int_to_ptr.vmem [resolvable:$true] %s2188_s15 }
  0x43   : > { %p2196_p7 = pneg %p2174_p3 }
  0x45   : > { %s2582_s16 = scalar_select %p2196_p7, 1, 0 }
  0x46   : > { %s2183_s20 = scalar_lea.hbm %s2581_s1, %s2169_s22  ;;  %s1797_s29 = scalar_lea.hbm %s2581_s1, 128 }
  0x47   : > { %s1792_s23 = scalar_lea.hbm %s2183_s20, 64  ;;  %p1798_p2 = scmp.lt.u32.totalorder %s2183_s20, %s2581_s1 }
  0x48   : > { %p1793_p5 = scmp.ne.s32.totalorder %s2183_s20, %s1792_s23  ;;  %p1799_p4 = scmp.lt.u32.totalorder %s1797_s29, %s1792_s23 }
  0x49   : > { %p1801_p8 = scmp.lt.u32.totalorder %s1792_s23, %s2183_s20 }
  0x4a   : > { %p1795_p9 = pnand %p2196_p7, %p1793_p5  ;;  %p1800_p6 = por %p1799_p4, %p1798_p2 }
  0x4c   : > { %p1796_p1 = pneg %p1795_p9  ;;  %p1802_p12 = por %p1801_p8, %p1800_p6 }
  0x4e   : > { %p1803_p0 = pnand %p1802_p12, %p1796_p1 }
  0x50   : > { %1806 = shalt.err (!%p1803_p0)
}
  0x51   : > { %s1807_s12 = scalar_lea.vmem %s2186_s3, 64  ;;  %s2006_s17 = smov [#allocation9]  }
  0x52   : > { %p1808_p5 = scmp.ne.s32.totalorder %s2186_s3, %s1807_s12  ;;  %s1812_s21 = sshll.u32 %s2006_s17, 4  ;;  %s1813_s21 = int_to_ptr.vmem [resolvable:$false] %s1812_s21 }
  0x53   : > { %s1814_s10 = scalar_lea.vmem %s1813_s21, 128  ;;  %p1815_p10 = scmp.lt.s32.totalorder %s2186_s3, %s1813_s21 }
  0x54   : > { %p1810_p9 = pnand %p1808_p5, %p2196_p7  ;;  %p1816_p11 = scmp.lt.s32.totalorder %s1814_s10, %s1807_s12 }
  0x56   : > { %p1811_p13 = pneg %p1810_p9  ;;  %p1817_p2 = por %p1816_p11, %p1815_p10 }
  0x58   : > { %p1818_p4 = pnand %p1817_p2, %p1811_p13 }
  0x5a   : > { %1821 = shalt.err (!%p1818_p4)
}
  0x5b   : > { %1651 = dma.hbm_to_vmem [thread:$0]  (!%p2174_p3), %s2183_s20, 64, %s2186_s3, %s2190_s28  }
  0x5c   : > { %s1822_s18 = scalar_lea.hbm %s2543_s4, 48  ;;  %p2583_p11 = scmp.ne.s32.totalorder %s2574_s14, 0 }
  0x5d   : > { %p1823_p1 = scmp.ne.s32.totalorder %s2543_s4, %s1822_s18  ;;  %p1829_p8 = scmp.lt.u32.totalorder %s1822_s18, %s2543_s4 }
  0x5e   : > { %p2584_p13 = pneg %p2583_p11 }
  0x60   : > { %p1825_p10 = pnand %p1823_p1, %p2584_p13 }
  0x62   : > { %p1826_p6 = pneg %p1825_p10 }
  0x64   : > { %p1831_p12 = pnand %p1829_p8, %p1826_p6 }
  0x66   : > { %1834 = shalt.err (!%p1831_p12)
}
  0x67   : > { %s1835_s3 = scalar_lea.vmem %s262_s15, 48  ;;  %p2585_p5 = pmov %p2584_p13 }
  0x68   : > { %p1836_p0 = scmp.ne.s32.totalorder %s262_s15, %s1835_s3  ;;  %s1842_s20 = scalar_lea.vmem %s262_s15, 64 }
  0x69   : > { %p1843_p4 = scmp.lt.s32.totalorder %s262_s15, %s262_s15  ;;  %p1844_p3 = scmp.lt.s32.totalorder %s1842_s20, %s1835_s3 }
  0x6a   : > { %p1838_p9 = pnand %p1836_p0, %p2585_p5 }
  0x6b   : > { %p1845_p7 = por %p1844_p3, %p1843_p4 }
  0x6c   : > { %p1839_p2 = pneg %p1838_p9 }
  0x6e   : > { %p1846_p1 = pnand %p1845_p7, %p1839_p2 }
  0x70   : > { %1849 = shalt.err (!%p1846_p1)
}
  0x71   : > { %s2007_s1 = smov 16   ;;  %s2008_s10 = smov 1  }
  0x72   : > { %1644 = dma.hbm_to_vmem [thread:$0]  (!%p2583_p11), %s2543_s4, 48, %s262_s15, [#allocation13], %s2007_s1, %s2007_s1, %s2008_s10  }
  0x73   : > { %s2245_s12 = scalar_lea.hbm %s2539_s0, %s2169_s22  ;;  %s285_s21 = scalar_lea.vmem [#allocation6], %s2166_s13 }
  0x74   : > { %s292_s3 = sshll.u32 %s285_s21, 4  ;;  %s2254_s14 = scalar_lea.hbm %s2541_s2, %s2169_s22  ;;  %s2248_s3 = int_to_ptr.vmem [resolvable:$true] %s292_s3 }
  0x75   : > { %s2586_s29 = sand.u32 1, %s1988_s26   ;;  %s1850_s1 = scalar_lea.hbm %s2245_s12, 64 }
  0x76   : > { %s282_s15 = scalar_lea.sflag [#allocation7], %s2586_s29  ;;  %p1851_p3 = scmp.ne.s32.totalorder %s2245_s12, %s1850_s1 }
  0x77   : > { %p2587_p7 = scmp.ne.s32.totalorder %s2582_s16, 0  ;;  %s1855_s18 = scalar_lea.hbm %s2539_s0, 128 }
  0x78   : > { %p1856_p10 = scmp.lt.u32.totalorder %s2245_s12, %s2539_s0  ;;  %p1857_p6 = scmp.lt.u32.totalorder %s1855_s18, %s1850_s1 }
  0x79   : > { %p1853_p11 = pnand %p1851_p3, %p2587_p7  ;;  %p1859_p12 = scmp.lt.u32.totalorder %s1850_s1, %s2245_s12 }
  0x7a   : > { %p1858_p8 = por %p1857_p6, %p1856_p10 }
  0x7b   : > { %p1854_p13 = pneg %p1853_p11 }
  0x7c   : > { %p1860_p0 = por %p1859_p12, %p1858_p8 }
  0x7e   : > { %p1861_p5 = pnand %p1860_p0, %p1854_p13 }
  0x80   : > { %1864 = shalt.err (!%p1861_p5)
}
  0x81   : > { %s1865_s24 = scalar_lea.vmem %s2248_s3, 64  ;;  %s2009_s22 = smov [#allocation6]  }
  0x82   : > { %p1866_p9 = scmp.ne.s32.totalorder %s2248_s3, %s1865_s24  ;;  %s1870_s20 = sshll.u32 %s2009_s22, 4  ;;  %s1871_s20 = int_to_ptr.vmem [resolvable:$false] %s1870_s20 }
  0x83   : > { %s1872_s29 = scalar_lea.vmem %s1871_s20, 128  ;;  %p1873_p1 = scmp.lt.s32.totalorder %s2248_s3, %s1871_s20 }
  0x84   : > { %p1868_p2 = pnand %p1866_p9, %p2587_p7  ;;  %p1874_p3 = scmp.lt.s32.totalorder %s1872_s29, %s1865_s24 }
  0x86   : > { %p1869_p4 = pneg %p1868_p2  ;;  %p1875_p11 = por %p1874_p3, %p1873_p1 }
  0x88   : > { %p1876_p10 = pnand %p1875_p11, %p1869_p4 }
  0x8a   : > { %1879 = shalt.err (!%p1876_p10)
}
  0x8b   : > { %p2588_p13 = scmp.ne.s32.totalorder %s2580_s8, 0  ;;  %s322_s1 = scalar_lea.vmem [#allocation11], %s2166_s13 }
  0x8c   : > { %s330_s10 = sshll.u32 %s322_s1, 4  ;;  %s1880_s23 = scalar_lea.hbm %s2254_s14, 64  ;;  %s331_s10 = int_to_ptr.vmem [resolvable:$true] %s330_s10 }
  0x8d   : > { %1648 = dma.hbm_to_vmem [thread:$0]  (!%p2588_p13), %s2245_s12, 64, %s2248_s3, %s282_s15  }
  0x8e   : > { %p1881_p6 = scmp.ne.s32.totalorder %s2254_s14, %s1880_s23  ;;  %s1885_s21 = scalar_lea.hbm %s2541_s2, 128 }
  0x8f   : > { %p1886_p0 = scmp.lt.u32.totalorder %s2254_s14, %s2541_s2  ;;  %p1887_p5 = scmp.lt.u32.totalorder %s1885_s21, %s1880_s23 }
  0x90   : > { %p1883_p8 = pnand %p1881_p6, %p2587_p7  ;;  %p1889_p2 = scmp.lt.u32.totalorder %s1880_s23, %s2254_s14 }
  0x91   : > { %p1888_p9 = por %p1887_p5, %p1886_p0 }
  0x92   : > { %p1884_p12 = pneg %p1883_p8 }
  0x93   : > { %p1890_p4 = por %p1889_p2, %p1888_p9 }
  0x95   : > { %p1891_p1 = pnand %p1890_p4, %p1884_p12 }
  0x97   : > { %1894 = shalt.err (!%p1891_p1)
}
  0x98   : > { %s1895_s13 = scalar_lea.vmem %s331_s10, 64  ;;  %s2010_s12 = smov [#allocation11]  }
  0x99   : > { %p1896_p3 = scmp.ne.s32.totalorder %s331_s10, %s1895_s13  ;;  %s1900_s3 = sshll.u32 %s2010_s12, 4  ;;  %s1901_s3 = int_to_ptr.vmem [resolvable:$false] %s1900_s3 }
  0x9a   : > { %s1902_s15 = scalar_lea.vmem %s1901_s3, 128  ;;  %p1903_p6 = scmp.lt.s32.totalorder %s331_s10, %s1901_s3 }
  0x9b   : > { %p1898_p11 = pnand %p1896_p3, %p2587_p7  ;;  %p1904_p8 = scmp.lt.s32.totalorder %s1902_s15, %s1895_s13 }
  0x9d   : > { %p1899_p10 = pneg %p1898_p11  ;;  %p1905_p13 = por %p1904_p8, %p1903_p6 }
  0x9f   : > { %p1906_p0 = pnand %p1905_p13, %p1899_p10 }
  0xa1   : > { %1909 = shalt.err (!%p1906_p0)
}
  0xa2   : > { %p2589_p5 = scmp.ne.s32.totalorder %s2580_s8, 0  ;;  %p2590_p12 = scmp.ne.s32.totalorder %s2573_s11, 0 }
  0xa3   : > { %s2301_s16 = sand.u32 (!%p2590_p12), 1, %s1984_s25   ;;  %p2591_p7 = scmp.ne.s32.totalorder (!%p2590_p12), %s2570_s9, 0 }
  0xa4   : > { %1654 = dma.hbm_to_vmem [thread:$0]  (!%p2589_p5), %s2254_s14, 64, %s331_s10, %s2190_s28  }
  0xa5   : > { %339 = sbr.rel (%p2590_p12) target bundleno = 1686 (0x696), region = 48  ;;  %s2304_s20 = sshll.u32 (!%p2590_p12), %s2301_s16, 2 }
  0xa6   : > { %s342_s29 = scalar_lea.sflag (!%p2590_p12), [#allocation7], %s2301_s16  ;;  %s345_s1 = scalar_lea.vmem (!%p2590_p12), [#allocation6], %s2304_s20 }
  0xac   : > { %1963 = dma.done.wait (%p2591_p7), %s342_s29, 64  }
  0xad   : > { %1965 = vsyncadd (%p2591_p7), %s342_s29, 4294967232  ;;  %s350_s28 = sand.u32 1, %s2093_s30   ;;  %s354_s8 = scalar_lea.vmem [#allocation9], %s2304_s20 }
  0xae   : > { %s351_s11 = scalar_lea.sflag [#allocation10], %s350_s28 }
  0xaf   : > { %1967 = dma.done.wait (%p2591_p7), %s351_s11, 128  }
  0xb0   : > { %1969 = vsyncadd (%p2591_p7), %s351_s11, 4294967168  ;;  %s363_s14 = scalar_lea.vmem [#allocation11], %s2304_s20  ;;  %p2592_p13 = scmp.eq.s32.totalorder %s2093_s30, 0 }
  0xb2   : > { %1971 = dma.done.wait (%p2592_p13), [#allocation13], 816   ;;  %p2593_p9 = pmov %p2592_p13 }
  0xb3   : > { %v2011_v0 = vmov 0.0   ;;  %vm2012_vm0 = vmmov 0   ;;  %v1731_v1 = vld [vmem:[#allocation12] sm:$0xff]   ;;  %v1732_v2 = vld [vmem:[#allocation12 + $0x10] sm:$0xff]   ;;  %v1733_v3 = vld [vmem:[#allocation12 + $0x8] sm:$0xff]   ;;  %vm441_vm1 = vcmask 261120  }
  0xb4   : > { %1973 = vsyncadd (%p2593_p9), [#allocation13], 4294966480  ;;  %1542 = vmatprep.subr.bf16.mxu0 %v2011_v0  ;;  %1550 = vmatprep.subr.bf16.mxu1 %v2011_v0  ;;  %v1734_v4 = vld [vmem:[#allocation12 + $0x18] sm:$0xff]   ;;  %v417_v5 = vld [vmem:[%s345_s1] sm:$0xf]  ;;  %vm497_vm2 = vcmask 64512  }
  0xb5   : > { %1546 = vmatprep.mubr.msk.bf16.mxu0 %vm2012_vm0, %v2011_v0  ;;  %1554 = vmatprep.mubr.msk.bf16.mxu1 %vm2012_vm0, %v2011_v0  ;;  %v502_v6 = vld [vmem:[%s354_s8] sm:$0xf]  ;;  %498 = vst.msk [vmem:[#allocation5] sm:$0xff] %vm497_vm2, %v2011_v0  ;;  %499 = vst.msk [vmem:[#allocation5 + $0x8] sm:$0xff] %vm497_vm2, %v2011_v0  ;;  %vm486_vm3 = vcmask 257024   ;;  %s2013_s30 = smov 112  }
  0xb6   : > { %1543 = vmatpush3.bf16.msra.mxu0 %v1731_v1  ;;  %1551 = vmatpush3.bf16.msra.mxu1 %v1732_v2  ;;  %500 = vst.msk [vmem:[#allocation5 + $0x10] sm:$0xff] %vm497_vm2, %v2011_v0  ;;  %501 = vst.msk [vmem:[#allocation5 + $0x18] sm:$0xff] %vm497_vm2, %v2011_v0  ;;  %v1485_v7 = vld [vmem:[#allocation14] ss:$0 sm:$0xff]  ;;  %v1489_v8 = vld [vmem:[#allocation14 + $0x1] ss:$0 sm:$0xff] }
  0xb7   : > { %1544 = vmatprep.subr.bf16.mxu0 %v2011_v0  ;;  %1552 = vmatprep.subr.bf16.mxu1 %v2011_v0  ;;  %s2014_s9 = smov 120   ;;  %s2015_s10 = smov 104   ;;  %v1736_v24 = vld [vmem:[#allocation12 + $0x20] sm:$0xff]   ;;  %v1737_v25 = vld [vmem:[#allocation12 + $0x28] sm:$0xff]   ;;  %v573_v26 = vld [vmem:[%s363_s14] sm:$0xf] }
  0xb8   : > { %vm488_vm4 = vcmask 7168   ;;  %v2016_v41 = vmov -inf   ;;  %v2017_v42 = vmov 0   ;;  %v1493_v62 = vld [vmem:[#allocation14 + $0x2] ss:$0 sm:$0xff]  ;;  %vm726_vm5 = vcmask 1043456  }
  0xb9   : > { %489 = vst.msk [vmem:[#allocation3] sm:$0xff] %vm488_vm4, %v2016_v41  ;;  %490 = vst.msk [vmem:[#allocation3 + $0x8] sm:$0xff] %vm488_vm4, %v2016_v41  ;;  %1729 = vset.pattern.permute.xlu1 %v2017_v42  ;;  %1730 = vset.pattern.permute.xlu0 %v2017_v42  ;;  %s2018_s24 = smov 8   ;;  %s2019_s22 = smov 16   ;;  %vm1238_vm6 = vcmask 130048   ;;  %vm1241_vm7 = vcmask 195584  }
  0xba   : > { %1545 = vmatpush3.bf16.msra.mxu0 %v1733_v3  ;;  %1553 = vmatpush3.bf16.msra.mxu1 %v1734_v4  ;;  %491 = vst.msk [vmem:[#allocation3 + $0x10] sm:$0xff] %vm488_vm4, %v2016_v41  ;;  %492 = vst.msk [vmem:[#allocation3 + $0x18] sm:$0xff] %vm488_vm4, %v2016_v41  ;;  %s2020_s13 = smov 24   ;;  %s1484_s12 = sshll.u32 %s2301_s16, 3 }
  0xbb   : > { %1558 = vmatprep.subr.bf16.mxu0 %v2011_v0  ;;  %1566 = vmatprep.subr.bf16.mxu1 %v2011_v0  ;;  %493 = vst.msk [vmem:[#allocation4] sm:$0xff] %vm488_vm4, %v2011_v0  ;;  %494 = vst.msk [vmem:[#allocation4 + $0x8] sm:$0xff] %vm488_vm4, %v2011_v0  ;;  %s1511_s20 = sshll.u32 %s1992_s27, 7  ;;  %s411_s29 = scalar_lea.vmem [#allocation15], %s1484_s12 }
  0xbc   : > { %495 = vst.msk [vmem:[#allocation4 + $0x10] sm:$0xff] %vm488_vm4, %v2011_v0  ;;  %496 = vst.msk [vmem:[#allocation4 + $0x18] sm:$0xff] %vm488_vm4, %v2011_v0  ;;  %s1324_s1 = sshll.u32 %s411_s29, 4  ;;  %s2489_s8 = scalar_lea.hbm %s2546_s7, %s1511_s20  ;;  %s2491_s1 = int_to_ptr.vmem [resolvable:$true] %s1324_s1 }
  0xbd   : > { %1547 = vmatmul.mubr.msk.bf16.vlgmr.msra.gmra.mrb[0].mxu0 %vm441_vm1, %v417_v5  ;;  %1555 = vmatmul.mubr.msk.bf16.vlgmr.msra.gmra.mrb[0].mxu1 %vm441_vm1, %v502_v6  ;;  %s1311_s27 = scalar_lea.sflag [#allocation8], %s2301_s16  ;;  %s1910_s14 = scalar_lea.vmem %s2491_s1, 128 }
  0xbe   : > { %1562 = vmatprep.mubr.msk.bf16.mxu0 %vm2012_vm0, %v2011_v0  ;;  %1568 = vmatprep.mubr.msk.bf16.mxu1 %vm2012_vm0, %v2011_v0  ;;  %p1911_p2 = scmp.ne.s32.totalorder %s2491_s1, %s1910_s14  ;;  %p2594_p4 = scmp.ne.s32.totalorder %s2578_s19, 0 }
  0xbf   : > { %1559 = vmatpush3.bf16.msra.mxu0 %v1736_v24 }
  0xc0   : > { %1560 = vmatprep.subr.bf16.mxu0 %v2011_v0  ;;  %v2408_v58 = vld [vmem:[#allocation3] sm:$0xff]  ;;  %p1912_p1 = pnand %p1911_p2, %p2594_p4 }
  0xc2   : > { %p1913_p3 = pneg %p1912_p1 }
  0xc3   : > { %1561 = vmatpush3.bf16.msra.mxu0 %v1737_v25 }
  0xc4   : > { %1572 = vmatprep.subr.bf16.mxu0 %v2011_v0 }
  0xc6   : > { %1563 = vmatmul.mubr.msk.bf16.vlgmr.msra.gmra.mrb[4].mxu0 %vm441_vm1, %v573_v26 }
  0xc7   : > { %1574 = vmatprep.mubr.msk.bf16.mxu0 %vm2012_vm0, %v2011_v0 }
 0x190   : > { %v479_v9 = vpop.f32.mrb[0].mxu0  ;;  %v566_v11 = vpop.f32.mrb[0].mxu1 }
 0x191   : > { %v480_v10 = vadd.f32 %v1485_v7, %v479_v9  ;;  %v1548_v12 = vpop.f32.mrb[1].mxu0  ;;  %v567_v13 = vadd.f32 %v1489_v8, %v566_v11  ;;  %v1556_v14 = vpop.f32.mrb[1].mxu1  ;;  %v828_v7 = vld [vmem:[#allocation3 + $0x8] sm:$0xff]  ;;  %v2421_v11 = vld [vmem:[#allocation3 + $0x10] sm:$0xff] }
 0x192   : > { %v482_v15 = vpop.f32.mrb[2].mxu0  ;;  %v569_v17 = vpop.f32.mrb[2].mxu1 }
 0x193   : > { %v485_v16 = vpack.c.bf16 %v480_v10, %v480_v10  ;;  %v1549_v18 = vpop.f32.mrb[3].mxu0  ;;  %v572_v19 = vpack.c.bf16 %v567_v13, %v567_v13  ;;  %v1557_v20 = vpop.f32.mrb[3].mxu1 }
 0x195   : > { %487 = vst.msk [vmem:[#allocation2] sm:$0xf] %vm486_vm3, %v485_v16  ;;  %915 = vrot.lane.b32.xlu1 %v572_v19, %s2013_s30  ;;  %779 = vrot.lane.b32.xlu0 %v572_v19, %s2014_s9  ;;  %v649_v21 = vsel %vm497_vm2, %v572_v19, 0  ;;  %v1099_v16 = vld [vmem:[#allocation3 + $0x18] sm:$0xff] }
 0x196   : > { %1567 = vmatpush3.bf16.xpose.msra.mxu1 %v649_v21 }
 0x197   : > { %1578 = vmatprep.subr.bf16.mxu1 %v2011_v0 }
 0x199   : > { %v636_v63 = vpop.f32.mrb[4].mxu0 }
 0x19a   : > { %v637_v1 = vadd.f32 %v1493_v62, %v636_v63  ;;  %v1564_v2 = vpop.f32.mrb[5].mxu0  ;;  %v845_v62 = vld [vmem:[#allocation4 + $0x8] sm:$0xff] }
 0x19b   : > { %v639_v3 = vpop.f32.mrb[6].mxu0 }
 0x19c   : > { %v643_v22 = vld [vmem:[#allocation2] sm:$0xf]  ;;  %v642_v4 = vpack.c.bf16 %v637_v1, %v637_v1  ;;  %v1565_v5 = vpop.f32.mrb[7].mxu0 }
 0x19d   : > { %v1499_v23 = vcombine.low %v643_v22, %v643_v22  ;;  %1569 = vmatmul.mubr.msk.bf16.vlgmr.msra.gmra.mrb[4].mxu1 %vm497_vm2, %v643_v22 }
 0x19e   : > { %1580 = vmatprep.mubr.msk.bf16.mxu1 %vm2012_vm0, %v2011_v0  ;;  %v728_v6 = vsel %vm726_vm5, %v642_v4, 0 }
 0x19f   : > { %913 = vrot.lane.b32.xlu1 %v1499_v23, %s2013_s30  ;;  %776 = vrot.lane.b32.xlu0 %v1499_v23, %s2014_s9 }
 0x1a0   : > { %1573 = vmatpush3.bf16.msra.mxu0 %v728_v6 }
 0x1a1   : > { %1584 = vmatprep.subr.bf16.mxu0 %v2011_v0 }
 0x1a3   : > { %1048 = vrot.lane.b32.xlu1 %v1499_v23, %s2015_s10  ;;  %1050 = vrot.lane.b32.xlu0 %v572_v19, %s2015_s10 }
 0x207   : > { %v780_v27 = vpop.permute.xlu0 %779  ;;  %v916_v29 = vpop.permute.xlu1 %915 }
 0x208   : > { %v785_v28 = vsel %vm497_vm2, %v780_v27, 0  ;;  %v921_v31 = vsel %vm497_vm2, %v916_v29, 0 }
 0x209   : > { %1579 = vmatpush3.bf16.xpose.msra.mxu1 %v785_v28 }
 0x20a   : > { %1590 = vmatprep.subr.bf16.mxu1 %v2011_v0 }
 0x211   : > { %v777_v30 = vpop.permute.xlu0 %776  ;;  %v914_v33 = vpop.permute.xlu1 %913 }
 0x212   : > { %1581 = vmatmul.mubr.msk.bf16.vlgmr.msra.gmra.mrb[8].mxu1 %vm497_vm2, %v777_v30 }
 0x213   : > { %1591 = vmatpush3.bf16.xpose.msra.mxu1 %v921_v31  ;;  %1592 = vmatprep.mubr.msk.bf16.mxu1 %vm2012_vm0, %v2011_v0 }
 0x214   : > { %1602 = vmatprep.subr.bf16.mxu1 %v2011_v0 }
 0x215   : > { %v1051_v32 = vpop.permute.xlu0 %1050  ;;  %v1049_v35 = vpop.permute.xlu1 %1048 }
 0x216   : > { %v1056_v34 = vsel %vm497_vm2, %v1051_v32, 0 }
 0x21a   : > { %1593 = vmatmul.mubr.msk.bf16.vlgmr.msra.gmra.mrb[12].mxu1 %vm497_vm2, %v914_v33 }
 0x21b   : > { %1603 = vmatpush3.bf16.xpose.msra.mxu1 %v1056_v34  ;;  %1604 = vmatprep.mubr.msk.bf16.mxu1 %vm2012_vm0, %v2011_v0 }
 0x21c   : > { %1614 = vmatprep.subr.bf16.mxu1 %v2011_v0 }
 0x222   : > { %1605 = vmatmul.mubr.msk.bf16.vlgmr.msra.gmra.mrb[16].mxu1 %vm497_vm2, %v1049_v35 }
 0x223   : > { %1618 = vmatprep.mubr.msk.bf16.mxu1 %vm2012_vm0, %v2011_v0 }
 0x270   : > { %v2380_v36 = vpop.f32.mrb[4].mxu1 }
 0x271   : > { %v1570_v37 = vpop.f32.mrb[5].mxu1  ;;  %v692_v38 = vsel %vm497_vm2, %v2380_v36, -inf }
 0x272   : > { %693 = vmax.xlane.f32.xlu0 %v692_v38  ;;  %v688_v39 = vpop.f32.mrb[6].mxu1 }
 0x273   : > { %v1571_v40 = vpop.f32.mrb[7].mxu1 }
 0x2e5   : > { %v2396_v43 = vpop.f32.mrb[8].mxu1 }
 0x2e6   : > { %v1582_v44 = vpop.f32.mrb[9].mxu1  ;;  %v829_v45 = vsel %vm497_vm2, %v2396_v43, -inf }
 0x2e7   : > { %830 = vmax.xlane.f32.xlu1 %v829_v45  ;;  %v824_v46 = vpop.f32.mrb[10].mxu1 }
 0x2e8   : > { %v1583_v47 = vpop.f32.mrb[11].mxu1 }
 0x2ed   : > { %v2400_v48 = vpop.f32.mrb[12].mxu1 }
 0x2ee   : > { %v1594_v49 = vpop.f32.mrb[13].mxu1  ;;  %v965_v50 = vsel %vm497_vm2, %v2400_v48, -inf }
 0x2ef   : > { %966 = vmax.xlane.f32.xlu0 %v965_v50  ;;  %v960_v51 = vpop.f32.mrb[14].mxu1 }
 0x2f0   : > { %v1595_v52 = vpop.f32.mrb[15].mxu1 }
 0x2f5   : > { %v2404_v53 = vpop.f32.mrb[16].mxu1 }
 0x2f6   : > { %v1606_v54 = vpop.f32.mrb[17].mxu1  ;;  %v1100_v55 = vsel %vm497_vm2, %v2404_v53, -inf }
 0x2f7   : > { %1101 = vmax.xlane.f32.xlu0 %v1100_v55  ;;  %v1095_v56 = vpop.f32.mrb[18].mxu1 }
 0x2f8   : > { %v1607_v57 = vpop.f32.mrb[19].mxu1 }
 0x2ff   : > { %v694_v59 = vpop.xlane.xlu0 %693 }
 0x300   : > { %v2411_v60 = vmax.f32 %v2408_v58, %v694_v59 }
 0x302   : > { %v696_v61 = vsub.f32 %v2408_v58, %v2411_v60  ;;  %772 = vst.msk [vmem:[#allocation3] sm:$0xff] %vm488_vm4, %v2411_v60  ;;  %701 = vperm.xlu1 %1729, %v2411_v60  }
 0x304   : > { %v697_v3 = vmul.f32 1.442695, %v696_v61 }
 0x374   : > { %v831_v8 = vpop.xlane.xlu1 %830 }
 0x375   : > { %v832_v9 = vmax.f32 %v828_v7, %v831_v8 }
 0x377   : > { %v833_v10 = vsub.f32 %v828_v7, %v832_v9  ;;  %912 = vst.msk [vmem:[#allocation3 + $0x8] sm:$0xff] %vm488_vm4, %v832_v9  ;;  %838 = vperm.xlu0 %1730, %v832_v9   ;;  %v1116_v9 = vld [vmem:[#allocation4 + $0x18] sm:$0xff] }
 0x379   : > { %v834_v46 = vmul.f32 1.442695, %v833_v10 }
 0x37c   : > { %v967_v12 = vpop.xlane.xlu0 %966 }
 0x37d   : > { %v2424_v13 = vmax.f32 %v2421_v11, %v967_v12 }
 0x37f   : > { %v969_v14 = vsub.f32 %v2421_v11, %v2424_v13  ;;  %1047 = vst.msk [vmem:[#allocation3 + $0x10] sm:$0xff] %vm488_vm4, %v2424_v13  ;;  %974 = vperm.xlu1 %1729, %v2424_v13   ;;  %v707_v13 = vld [vmem:[#allocation4] sm:$0xff] }
 0x381   : > { %v702_v15 = vpop.permute.xlu1 %701  ;;  %v970_v49 = vmul.f32 1.442695, %v969_v14 }
 0x382   : > { %v704_v17 = vsub.f32 %v2380_v36, %v702_v15 }
 0x384   : > { %v1102_v18 = vpop.xlane.xlu0 %1101  ;;  %v705_v19 = vmul.f32 1.442695, %v704_v17 }
 0x385   : > { %v1103_v20 = vmax.f32 %v1099_v16, %v1102_v18 }
 0x386   : > { %1740 = vpow2.f32 %v705_v19 }
 0x387   : > { %v1104_v21 = vsub.f32 %v1099_v16, %v1103_v20  ;;  %1182 = vst.msk [vmem:[#allocation3 + $0x18] sm:$0xff] %vm488_vm4, %v1103_v20  ;;  %1109 = vperm.xlu1 %1729, %v1103_v20  }
 0x389   : > { %v1105_v51 = vmul.f32 1.442695, %v1104_v21 }
 0x38b   : > { %862 = vrot.lane.b32.xlu1 %v642_v4, %s2014_s9 }
 0x38f   : > { %997 = vrot.lane.b32.xlu1 %v642_v4, %s2013_s30  ;;  %s2021_s30 = smov [#allocation15]  }
 0x390   : > { %v1741_v22 = vpop.eup %1740  ;;  %s1914_s9 = sshll.u32 %s2021_s30, 4  ;;  %s1915_s9 = int_to_ptr.vmem [resolvable:$false] %s1914_s9 }
 0x391   : > { %v722_v23 = vpack.c.bf16 %v1741_v22, %v1741_v22  ;;  %p1917_p11 = scmp.lt.s32.totalorder %s2491_s1, %s1915_s9 }
 0x393   : > { %1132 = vrot.lane.b32.xlu1 %v642_v4, %s2015_s10  ;;  %1575 = vmatmul.mubr.msk.bf16.vlgmr.msra.gmra.mrb[8].mxu0 %vm497_vm2, %v722_v23  ;;  %v981_v4 = vld [vmem:[#allocation4 + $0x10] sm:$0xff]  ;;  %s1916_s10 = scalar_lea.vmem %s1915_s9, 256 }
 0x394   : > { %1586 = vmatprep.mubr.msk.bf16.mxu0 %vm2012_vm0, %v2011_v0  ;;  %p1918_p10 = scmp.lt.s32.totalorder %s1916_s10, %s1910_s14 }
 0x396   : > { %p1919_p6 = por %p1918_p10, %p1917_p11 }
 0x398   : > { %p1920_p8 = pnand %p1919_p6, %p1913_p3 }
 0x3f6   : > { %v839_v24 = vpop.permute.xlu0 %838 }
 0x3f7   : > { %v841_v25 = vsub.f32 %v2396_v43, %v839_v24 }
 0x3f9   : > { %v842_v26 = vmul.f32 1.442695, %v841_v25 }
 0x3fb   : > { %1742 = vpow2.f32 %v842_v26 }
 0x3fe   : > { %v975_v27 = vpop.permute.xlu1 %974 }
 0x3ff   : > { %v977_v28 = vsub.f32 %v2400_v48, %v975_v27  ;;  %v709_v48 = vsel %vm497_vm2, %v1741_v22, 0.0  ;;  %v853_v22 = vld [vmem:[#allocation5 + $0x8] sm:$0xff] }
 0x401   : > { %v978_v29 = vmul.f32 1.442695, %v977_v28 }
 0x403   : > { %1744 = vpow2.f32 %v978_v29 }
 0x405   : > { %v1743_v30 = vpop.eup %1742 }
 0x406   : > { %v1110_v31 = vpop.permute.xlu1 %1109  ;;  %v847_v32 = vsel %vm497_vm2, %v1743_v30, 0.0  ;;  %v860_v38 = vpack.c.bf16 %v1743_v30, %v1743_v30  ;;  %v989_v30 = vld [vmem:[#allocation5 + $0x10] sm:$0xff] }
 0x407   : > { %v1112_v33 = vsub.f32 %v2404_v53, %v1110_v31  ;;  %848 = vadd.xlane.f32.xlu1 %v847_v32 }
 0x409   : > { %v1113_v34 = vmul.f32 1.442695, %v1112_v33 }
 0x40a   : > { %v863_v35 = vpop.permute.xlu1 %862 }
 0x40b   : > { %1746 = vpow2.f32 %v1113_v34  ;;  %v868_v36 = vsel %vm726_vm5, %v863_v35, 0 }
 0x40c   : > { %1585 = vmatpush3.bf16.msra.mxu0 %v868_v36  ;;  %1748 = vpow2.f32 %v834_v46 }
 0x40d   : > { %v1745_v37 = vpop.eup %1744  ;;  %1596 = vmatprep.subr.bf16.mxu0 %v2011_v0  ;;  %1750 = vpow2.f32 %v970_v49 }
 0x40e   : > { %v983_v39 = vsel %vm497_vm2, %v1745_v37, 0.0  ;;  %v998_v40 = vpop.permute.xlu1 %997  ;;  %v996_v44 = vpack.c.bf16 %v1745_v37, %v1745_v37  ;;  %1752 = vpow2.f32 %v1105_v51 }
 0x40f   : > { %984 = vadd.xlane.f32.xlu0 %v983_v39  ;;  %1587 = vmatmul.mubr.msk.bf16.vlgmr.msra.gmra.mrb[12].mxu0 %vm497_vm2, %v860_v38  ;;  %v1003_v41 = vsel %vm726_vm5, %v998_v40, 0  ;;  %1754 = vpow2.f32 %v697_v3  ;;  %v1124_v38 = vld [vmem:[#allocation5 + $0x18] sm:$0xff] }
 0x410   : > { %1597 = vmatpush3.bf16.msra.mxu0 %v1003_v41  ;;  %1598 = vmatprep.mubr.msk.bf16.mxu0 %vm2012_vm0, %v2011_v0 }
 0x411   : > { %1608 = vmatprep.subr.bf16.mxu0 %v2011_v0 }
 0x412   : > { %v1133_v42 = vpop.permute.xlu1 %1132 }
 0x413   : > { %v1138_v45 = vsel %vm726_vm5, %v1133_v42, 0 }
 0x415   : > { %v1747_v43 = vpop.eup %1746 }
 0x416   : > { %v1118_v47 = vsel %vm497_vm2, %v1747_v43, 0.0  ;;  %v1131_v50 = vpack.c.bf16 %v1747_v43, %v1747_v43  ;;  %v1749_v52 = vpop.eup %1748 }
 0x417   : > { %1119 = vadd.xlane.f32.xlu1 %v1118_v47  ;;  %1599 = vmatmul.mubr.msk.bf16.vlgmr.msra.gmra.mrb[16].mxu0 %vm497_vm2, %v996_v44  ;;  %v1751_v53 = vpop.eup %1750  ;;  %v846_v63 = vmul.f32 %v1749_v52, %v845_v62 }
 0x418   : > { %1609 = vmatpush3.bf16.msra.mxu0 %v1138_v45  ;;  %1610 = vmatprep.mubr.msk.bf16.mxu0 %vm2012_vm0, %v2011_v0  ;;  %v1753_v54 = vpop.eup %1752  ;;  %v982_v5 = vmul.f32 %v1751_v53, %v981_v4 }
 0x419   : > { %v1117_v10 = vmul.f32 %v1753_v54, %v1116_v9  ;;  %v1755_v11 = vpop.eup %1754 }
 0x41a   : > { %v708_v58 = vmul.f32 %v1755_v11, %v707_v13  ;;  %v1506_v13 = vld [vmem:[%s2545_s6] ss:$0 sm:$0xff] }
 0x41b   : > { %710 = vadd.xlane.f32.xlu1 %v709_v48  ;;  %v1738_v48 = vld [vmem:[%s2544_s5] sm:$0xff]  }
 0x41c   : > { %1615 = vmatpush3.bf16.msra.mxu1 %v1738_v48 }
 0x41d   : > { %1616 = vmatprep.subr.bf16.mxu1 %v2011_v0 }
 0x41f   : > { %1611 = vmatmul.mubr.msk.bf16.vlgmr.msra.gmra.mrb[20].mxu0 %vm497_vm2, %v1131_v50  ;;  %v1739_v50 = vld [vmem:[%s2544_s5 + $0x8] sm:$0xff]  }
 0x420   : > { %1617 = vmatpush3.bf16.msra.mxu1 %v1739_v50 }
 0x425   : > { %856 = vperm.xlu0 %1730, %v1749_v52  }
 0x42c   : > { %992 = vperm.xlu1 %1729, %v1751_v53  }
 0x430   : > { %1127 = vperm.xlu1 %1729, %v1753_v54  }
 0x466   : > { %v2458_v55 = vpop.f32.mrb[8].mxu0 }
 0x467   : > { %v1576_v56 = vpop.f32.mrb[9].mxu0 }
 0x468   : > { %v767_v57 = vpop.f32.mrb[10].mxu0  ;;  %v715_v56 = vld [vmem:[#allocation5] sm:$0xff] }
 0x469   : > { %v1577_v59 = vpop.f32.mrb[11].mxu0 }
 0x494   : > { %v849_v1 = vpop.xlane.xlu1 %848 }
 0x495   : > { %v850_v2 = vadd.f32 %v849_v1, %v846_v63 }
 0x497   : > { %851 = vst.msk [vmem:[#allocation4 + $0x8] sm:$0xff] %vm488_vm4, %v850_v2 }
 0x49c   : > { %v985_v6 = vpop.xlane.xlu0 %984 }
 0x49d   : > { %v986_v7 = vadd.f32 %v985_v6, %v982_v5 }
 0x49e   : > { %v1196_v8 = vld [vmem:[#allocation4 + $0x8] sm:$0xff] }
 0x49f   : > { %987 = vst.msk [vmem:[#allocation4 + $0x10] sm:$0xff] %vm488_vm4, %v986_v7  ;;  %1756 = vrcp.f32 %v1196_v8 }
 0x4a4   : > { %v1120_v12 = vpop.xlane.xlu1 %1119  ;;  %v857_v23 = vpop.permute.xlu0 %856 }
 0x4a5   : > { %v1121_v14 = vadd.f32 %v1120_v12, %v1117_v10  ;;  %v859_v24 = vmul.f32 %v857_v23, %v853_v22 }
 0x4a6   : > { %v1206_v15 = vld [vmem:[#allocation4 + $0x10] sm:$0xff] }
 0x4a7   : > { %1122 = vst.msk [vmem:[#allocation4 + $0x18] sm:$0xff] %vm488_vm4, %v1121_v14  ;;  %1758 = vrcp.f32 %v1206_v15 }
 0x4a8   : > { %v711_v60 = vpop.xlane.xlu1 %710 }
 0x4a9   : > { %v1757_v61 = vpop.eup %1756  ;;  %v712_v16 = vadd.f32 %v711_v60, %v708_v58 }
 0x4aa   : > { %1201 = vperm.xlu0 %1730, %v1757_v61  }
 0x4ab   : > { %714 = vst.msk [vmem:[#allocation4] sm:$0xff] %vm488_vm4, %v712_v16 }
 0x4ac   : > { %v993_v31 = vpop.permute.xlu1 %992 }
 0x4ad   : > { %v995_v32 = vmul.f32 %v993_v31, %v989_v30 }
 0x4ae   : > { %v1216_v17 = vld [vmem:[#allocation4 + $0x18] sm:$0xff] }
 0x4af   : > { %1760 = vrcp.f32 %v1216_v17 }
 0x4b0   : > { %v1128_v39 = vpop.permute.xlu1 %1127 }
 0x4b1   : > { %v1759_v18 = vpop.eup %1758  ;;  %v1130_v40 = vmul.f32 %v1128_v39, %v1124_v38 }
 0x4b2   : > { %1211 = vperm.xlu1 %1729, %v1759_v18   ;;  %v1186_v19 = vld [vmem:[#allocation4] sm:$0xff] }
 0x4b3   : > { %1762 = vrcp.f32 %v1186_v19 }
 0x4b6   : > { %718 = vperm.xlu1 %1729, %v1755_v11  }
 0x4b9   : > { %v1761_v20 = vpop.eup %1760 }
 0x4ba   : > { %1221 = vperm.xlu0 %1730, %v1761_v20  }
 0x4bd   : > { %v1763_v21 = vpop.eup %1762 }
 0x4be   : > { %1191 = vperm.xlu0 %1730, %v1763_v21  }
 0x4e2   : > { %v904_v25 = vpop.f32.mrb[12].mxu0 }
 0x4e3   : > { %v910_v26 = vadd.f32 %v904_v25, %v859_v24  ;;  %v1588_v27 = vpop.f32.mrb[13].mxu0 }
 0x4e4   : > { %v907_v28 = vpop.f32.mrb[14].mxu0 }
 0x4e5   : > { %911 = vst.msk [vmem:[#allocation5 + $0x8] sm:$0xff] %vm497_vm2, %v910_v26  ;;  %v1589_v29 = vpop.f32.mrb[15].mxu0 }
 0x4ea   : > { %v1039_v33 = vpop.f32.mrb[16].mxu0 }
 0x4eb   : > { %v1045_v34 = vadd.f32 %v1039_v33, %v995_v32  ;;  %v1600_v35 = vpop.f32.mrb[17].mxu0 }
 0x4ec   : > { %v1042_v36 = vpop.f32.mrb[18].mxu0  ;;  %v1198_v47 = vld [vmem:[#allocation5 + $0x8] sm:$0xff] }
 0x4ed   : > { %1046 = vst.msk [vmem:[#allocation5 + $0x10] sm:$0xff] %vm497_vm2, %v1045_v34  ;;  %v1601_v37 = vpop.f32.mrb[19].mxu0 }
 0x4f2   : > { %v1174_v41 = vpop.f32.mrb[20].mxu0 }
 0x4f3   : > { %v1180_v42 = vadd.f32 %v1174_v41, %v1130_v40  ;;  %v1612_v43 = vpop.f32.mrb[21].mxu0 }
 0x4f4   : > { %v1177_v44 = vpop.f32.mrb[22].mxu0  ;;  %v1208_v53 = vld [vmem:[#allocation5 + $0x10] sm:$0xff] }
 0x4f5   : > { %1181 = vst.msk [vmem:[#allocation5 + $0x18] sm:$0xff] %vm497_vm2, %v1180_v42  ;;  %v1613_v45 = vpop.f32.mrb[23].mxu0 }
 0x4fc   : > { %v1218_v2 = vld [vmem:[#allocation5 + $0x18] sm:$0xff] }
 0x529   : > { %v1202_v46 = vpop.permute.xlu0 %1201 }
 0x52a   : > { %v1204_v49 = vmul.f32 %v1202_v46, %v1198_v47 }
 0x52c   : > { %v1205_v51 = vpack.c.bf16 %v1204_v49, %v1204_v49 }
 0x52e   : > { %1227 = vrot.lane.b32.xlu1 %v1205_v51, %s2018_s24 }
 0x531   : > { %v1212_v52 = vpop.permute.xlu1 %1211 }
 0x532   : > { %v1214_v54 = vmul.f32 %v1212_v52, %v1208_v53 }
 0x534   : > { %v1215_v57 = vpack.c.bf16 %v1214_v54, %v1214_v54 }
 0x535   : > { %v719_v59 = vpop.permute.xlu1 %718 }
 0x536   : > { %v721_v62 = vmul.f32 %v719_v59, %v715_v56  ;;  %1230 = vrot.lane.b32.xlu0 %v1215_v57, %s2019_s22 }
 0x538   : > { %v770_v63 = vadd.f32 %v2458_v55, %v721_v62 }
 0x539   : > { %v1222_v1 = vpop.permute.xlu0 %1221 }
 0x53a   : > { %771 = vst.msk [vmem:[#allocation5] sm:$0xff] %vm497_vm2, %v770_v63  ;;  %v1224_v3 = vmul.f32 %v1222_v1, %v1218_v2 }
 0x53c   : > { %v1225_v0 = vpack.c.bf16 %v1224_v3, %v1224_v3 }
 0x53d   : > { %v1192_v5 = vpop.permute.xlu0 %1191 }
 0x53e   : > { %1233 = vrot.lane.b32.xlu1 %v1225_v0, %s2020_s13 }
 0x541   : > { %v1188_v4 = vld [vmem:[#allocation5] sm:$0xff] }
 0x542   : > { %v1194_v6 = vmul.f32 %v1192_v5, %v1188_v4 }
 0x544   : > { %v1195_v8 = vpack.c.bf16 %v1194_v6, %v1194_v6 }
 0x5a0   : > { %v1228_v7 = vpop.permute.xlu1 %1227 }
 0x5a1   : > { %v1237_v55 = vsel %vm497_vm2, %v1195_v8, %v1228_v7 }
 0x5a8   : > { %v1231_v9 = vpop.permute.xlu0 %1230 }
 0x5a9   : > { %v1240_v10 = vsel %vm1238_vm6, %v1237_v55, %v1231_v9 }
 0x5b0   : > { %v1234_v11 = vpop.permute.xlu1 %1233 }
 0x5b1   : > { %v1243_v12 = vsel %vm1241_vm7, %v1240_v10, %v1234_v11 }
 0x5b2   : > { %1619 = vmatmul.mubr.msk.bf16.vlgmr.msra.gmra.mrb[20].mxu1 %vm441_vm1, %v1243_v12 }
 0x685   : > { %v1303_v14 = vpop.f32.mrb[20].mxu1 }
 0x686   : > { %v1304_v15 = vadd.f32 %v1506_v13, %v1303_v14  ;;  %v1620_v58 = vpop.f32.mrb[21].mxu1 }
 0x687   : > { %v1306_v60 = vpop.f32.mrb[22].mxu1 }
 0x688   : > { %v1621_v61 = vpop.f32.mrb[23].mxu1  ;;  %1309 = vst.msk [vmem:[%s411_s29] sm:$0xff] %vm441_vm1, %v1304_v15 }
 0x689   : > { %1923 = shalt.err (!%p1920_p8)
}
 0x68a   : > { %s1924_s16 = scalar_lea.hbm %s2489_s8, 128  ;;  %s1928_s17 = scalar_lea.hbm %s2546_s7, 256 }
 0x68b   : > { %p1925_p0 = scmp.ne.s32.totalorder %s2489_s8, %s1924_s16  ;;  %p1929_p7 = scmp.lt.u32.totalorder %s2489_s8, %s2546_s7 }
 0x68c   : > { %p1930_p13 = scmp.lt.u32.totalorder %s1928_s17, %s1924_s16  ;;  %p1932_p2 = scmp.lt.u32.totalorder %s1924_s16, %s2489_s8 }
 0x68d   : > { %p1926_p5 = pnand %p1925_p0, %p2594_p4 }
 0x68e   : > { %p1931_p9 = por %p1930_p13, %p1929_p7 }
 0x68f   : > { %p1927_p12 = pneg %p1926_p5 }
 0x690   : > { %p1933_p1 = por %p1932_p2, %p1931_p9 }
 0x692   : > { %p1934_p3 = pnand %p1933_p1, %p1927_p12 }
 0x694   : > { %1937 = shalt.err (!%p1934_p3)
}
 0x695   : > { %1636 = dma.vmem_to_hbm [thread:$0]  (%p2594_p4), %s2491_s1, 128, %s2489_s8, %s1311_s27  }
 0x696 PF: > { %s2595_s22 = sld [smem:[#allocation20_spill]]  ;;  %s2596_s13 = sld [smem:[#allocation23_spill]] }
 0x697   : > { %s2597_s12 = sld [smem:[#allocation22_spill]] }
 0x69c   : > { %s1336_s3 = sand.u32 1, %s2595_s22   ;;  %p2598_p11 = scmp.ne.s32.totalorder %s2596_s13, 0 }
 0x69d   : > { %p2599_p10 = scmp.ge.s32.totalorder %s2597_s12, 2  ;;  %s1337_s15 = scalar_lea.sflag [#allocation8], %s1336_s3 }
 0x69f   : > { %p1656_p6 = pnand %p2599_p10, %p2598_p11 }
 0x6a1   : > { %1975 = dma.done.wait (!%p1656_p6), %s1337_s15, 128  }
 0x6a2   : > { %1977 = vsyncadd (!%p1656_p6), %s1337_s15, 4294967168  ;;  %s27_s29 = sadd.s32 1, %s2597_s12   ;;  %s2600_s19 = sld [smem:[#allocation25_spill]] }
 0x6a3   : > { %p24_p8 = scmp.ge.s32.totalorder %s27_s29, 4   ;;  %s2601_s27 = sld [smem:[#allocation21_spill]] }
 0x6a4   : > { %s2602_s28 = sld [smem:[#allocation24_spill]]  ;;  %s2603_s24 = smov %s1984_s25 }
 0x6a5   : > { %s2604_s25 = smov %s1988_s26  ;;  %26 = sbr.rel (!%p24_p8) target bundleno = 12 (0xc), region = 146 }
 0x6a8   : > { %s2605_s26 = smov %s2600_s19 }
 0x6ac   :  { %1342 = vsyncpa [#allocation7], 1 }
 0x6ad   :  { %1344 = vsyncpa [#allocation7 + $0x1], 1 }
 0x6ae   :  { %1345 = vsyncpa [#allocation10], 1 }
 0x6af   :  { %1347 = vsyncpa [#allocation10 + $0x1], 1 }
 0x6b0   :  { %1348 = vsyncpa [#allocation13], 1 }
 0x6b1   :  { %1349 = vsyncpa [#allocation8], 1 }
 0x6b2   :  { %1351 = vsyncpa [#allocation8 + $0x1], 1 }

</bundles_post_ra>
